<compile_context>
chip_gen: v7x
topology: tpu7x:2x2x1
jax: 0.10.0
libtpu: 0.0.40
codegen_flags: <defaults>
</compile_context>

<pallas_src>
import jax
import jax.numpy as jnp
import numpy as np
from jax.experimental import pallas as pl
from jax.experimental.pallas import tpu as pltpu

EPS = 1e-5
K = 4  # kernel size of every ConvTranspose2d in the generator


def _round_up(x, m):
    return (x + m - 1) // m * m


def _pick_tm(m):
    if m >= 512:
        return 512
    if m >= 128:
        return _round_up(m, 128)
    return _round_up(m, 8)


# ----------------------------- Pallas kernels ------------------------------

def _gemm_kernel(x_ref, w_ref, y_ref):
    # Layer-1 GEMM: raw (noise|label) rows, no input activation.
    x = x_ref[...].astype(jnp.bfloat16)
    y_ref[...] = jnp.dot(x, w_ref[...], preferred_element_type=jnp.float32)


def _bn_relu_gemm_kernel(x_ref, scale_ref, shift_ref, w_ref, y_ref):
    # Fused: y = relu(x * scale + shift) @ W
    # (previous layer's BatchNorm-apply + ReLU folded into this layer's GEMM;
    #  affine/ReLU in f32, matmul operands in bf16, f32 accumulation).
    a = jnp.maximum(x_ref[...] * scale_ref[...] + shift_ref[...], 0.0)
    y_ref[...] = jnp.dot(a.astype(jnp.bfloat16), w_ref[...],
                         preferred_element_type=jnp.float32)


def _stats_kernel(x_ref, o_ref):
    # Per-channel sum / sum-of-squares accumulated across M tiles into a single
    # resident (2, C) block -> global (train-mode) BatchNorm batch statistics.
    @pl.when(pl.program_id(0) == 0)
    def _():
        o_ref[...] = jnp.zeros_like(o_ref)

    x = x_ref[...]
    s = jnp.sum(x, axis=0, keepdims=True)
    ss = jnp.sum(x * x, axis=0, keepdims=True)
    o_ref[...] += jnp.concatenate([s, ss], axis=0)


# ------------------------------ wrappers ------------------------------------

def fused_gemm(x, w_mat, scale=None, shift=None):
    """y[m, (kh,kw,co)] = act(x)[m, :] @ w_mat  with act = optional BN+ReLU."""
    m, cin = x.shape
    cols = w_mat.shape[1]

    # Pad the contraction dim to a multiple of 16 (bf16 sublane packing).
    kp = _round_up(cin, 16)
    if kp != cin:
        x = jnp.pad(x, ((0, 0), (0, kp - cin)))
        w_mat = jnp.pad(w_mat, ((0, kp - cin), (0, 0)))
        if scale is not None:
            scale = jnp.pad(scale, ((0, 0), (0, kp - cin)))
            shift = jnp.pad(shift, ((0, 0), (0, kp - cin)))
    w_bf = w_mat.astype(jnp.bfloat16)

    # Tile M; pad rows so the grid divides evenly (padded rows dropped below).
    tm = _pick_tm(m)
    mp = _round_up(m, tm)
    if mp != m:
        x = jnp.pad(x, ((0, mp - m), (0, 0)))
    grid = (mp // tm,)

    # VMEM budget: double-buffered in/out tiles + resident weights (+headroom),
    # capped at 64 MiB so the same sizing is valid on v7x.
    vmem_est = 2 * (tm * kp * 4 + kp * cols * 2 + tm * cols * 4) + (2 << 20)
    compiler_params = pltpu.CompilerParams(
        dimension_semantics=("parallel",),
        vmem_limit_bytes=int(min(64 << 20, max(vmem_est, 32 << 20))),
    )
    cost = pl.CostEstimate(
        flops=2 * mp * kp * cols,
        transcendentals=0,
        bytes_accessed=mp * kp * 4 + kp * cols * 2 + mp * cols * 4,
    )

    x_spec = pl.BlockSpec((tm, kp), lambda i: (i, 0))
    w_spec = pl.BlockSpec((kp, cols), lambda i: (0, 0))
    y_spec = pl.BlockSpec((tm, cols), lambda i: (i, 0))

    if scale is None:
        kernel = _gemm_kernel
        in_specs = [x_spec, w_spec]
        args = (x, w_bf)
    else:
        vec_spec = pl.BlockSpec((1, kp), lambda i: (0, 0))
        kernel = _bn_relu_gemm_kernel
        in_specs = [x_spec, vec_spec, vec_spec, w_spec]
        args = (x, scale, shift, w_bf)

    y = pl.pallas_call(
        kernel,
        out_shape=jax.ShapeDtypeStruct((mp, cols), jnp.float32),
        grid=grid,
        in_specs=in_specs,
        out_specs=y_spec,
        compiler_params=compiler_params,
        cost_estimate=cost,
    )(*args)
    return y[:m]


def channel_sum_sumsq(x):
    """x: (M, C) f32 -> (2, C): [sum; sum of squares] over rows, M-tiled."""
    m, c = x.shape
    tm = _pick_tm(m)
    mp = _round_up(m, tm)
    if mp != m:
        x = jnp.pad(x, ((0, mp - m), (0, 0)))   # zero rows don't change sums
    return pl.pallas_call(
        _stats_kernel,
        out_shape=jax.ShapeDtypeStruct((2, c), jnp.float32),
        grid=(mp // tm,),
        in_specs=[pl.BlockSpec((tm, c), lambda i: (i, 0))],
        out_specs=pl.BlockSpec((2, c), lambda i: (0, 0)),
        compiler_params=pltpu.CompilerParams(
            dimension_semantics=("arbitrary",)),  # resident accumulator
    )(x)


def _bn_scale_shift(o_flat, gamma, beta):
    # Global train-mode BN stats (biased variance), finalized per channel.
    count = float(o_flat.shape[0])
    sums = channel_sum_sumsq(o_flat)
    mean = sums[0] / count
    var = jnp.maximum(sums[1] / count - mean * mean, 0.0)
    scale = gamma * jax.lax.rsqrt(var + EPS)
    shift = beta - mean * scale
    return scale.reshape(1, -1), shift.reshape(1, -1)


def _col2im_s2k4p1(y6):
    """Overlap-add for ConvTranspose2d(k=4, s=2, p=1).

    y6: (N, H, W, 4, 4, Cout) per-input-pixel contributions (cols = (kh,kw,co))
    -> (N, 2H, 2W, Cout).  Each output pixel sums exactly 2x2 contributions.
    """
    n, h, w, _, _, c = y6.shape
    yp = jnp.pad(y6, ((0, 0), (1, 1), (1, 1), (0, 0), (0, 0), (0, 0)))
    rows = []
    for a in (0, 1):            # output row parity
        cols_ = []
        for b in (0, 1):        # output col parity
            acc = 0.0
            for dh in (0, 1):
                for dw in (0, 1):
                    kh = 3 - a - 2 * dh
                    kw = 3 - b - 2 * dw
                    acc = acc + yp[:, a + dh:a + dh + h,
                                   b + dw:b + dw + w, kh, kw, :]
            cols_.append(acc)
        rows.append(jnp.stack(cols_, axis=-2))   # (N, H, W, 2, C)
    out = jnp.stack(rows, axis=2)                # (N, H, 2, W, 2, C)
    return out.reshape(n, 2 * h, 2 * w, c)


def _weight_to_gemm(w):
    # PyTorch ConvTranspose2d weight (Cin, Cout, K, K) -> (Cin, K*K*Cout) with
    # columns ordered (kh, kw, co); no spatial flip for the transposed-conv GEMM.
    cin, cout = w.shape[0], w.shape[1]
    return jnp.transpose(w, (0, 2, 3, 1)).reshape(cin, K * K * cout)


# ------------------------------ Generator -----------------------------------

def init_params(key, latent_dim, n_classes, ngf, channels):
    cin0 = latent_dim + n_classes
    ks = jax.random.split(key, 4)

    def w(k, cin, cout):
        return 0.02 * jax.random.normal(k, (cin, cout, K, K), jnp.float32)

    return {
        "w1": w(ks[0], cin0, ngf * 4),
        "g1": jnp.ones((ngf * 4,), jnp.float32), "b1": jnp.zeros((ngf * 4,), jnp.float32),
        "w2": w(ks[1], ngf * 4, ngf * 2),
        "g2": jnp.ones((ngf * 2,), jnp.float32), "b2": jnp.zeros((ngf * 2,), jnp.float32),
        "w3": w(ks[2], ngf * 2, ngf),
        "g3": jnp.ones((ngf,), jnp.float32), "b3": jnp.zeros((ngf,), jnp.float32),
        "w4": w(ks[3], ngf, channels),
    }


def generator_forward(noise, labels, p):
    n = noise.shape[0]
    x0 = jnp.concatenate([noise.reshape(n, -1), labels.reshape(n, -1)], axis=1)

    # Layer 1: ConvT(cin0 -> 4*ngf, k4, s1, p0) on a 1x1 input == dense GEMM
    # with lane-dense columns (kh, kw, co); output is directly NHWC 4x4.
    c1 = p["g1"].shape[0]
    y1 = fused_gemm(x0, _weight_to_gemm(p["w1"]))              # (N, 16*c1)
    o1 = y1.reshape(n, 4, 4, c1)                                # pre-BN, NHWC
    s1, b1 = _bn_scale_shift(o1.reshape(-1, c1), p["g1"], p["b1"])

    # Layer 2: BN1+ReLU fused into the GEMM lhs; overlap-add to (N, 8, 8, c2).
    c2 = p["g2"].shape[0]
    y2 = fused_gemm(o1.reshape(-1, c1), _weight_to_gemm(p["w2"]), s1, b1)
    o2 = _col2im_s2k4p1(y2.reshape(n, 4, 4, K, K, c2))
    s2, b2 = _bn_scale_shift(o2.reshape(-1, c2), p["g2"], p["b2"])

    # Layer 3
    c3 = p["g3"].shape[0]
    y3 = fused_gemm(o2.reshape(-1, c2), _weight_to_gemm(p["w3"]), s2, b2)
    o3 = _col2im_s2k4p1(y3.reshape(n, 8, 8, K, K, c3))
    s3, b3 = _bn_scale_shift(o3.reshape(-1, c3), p["g3"], p["b3"])

    # Layer 4 + Tanh
    cc = p["w4"].shape[1]
    y4 = fused_gemm(o3.reshape(-1, c3), _weight_to_gemm(p["w4"]), s3, b3)
    o4 = _col2im_s2k4p1(y4.reshape(n, 16, 16, K, K, cc))
    # TODO(synk): the stride-2 overlap-add (col2im) + tanh stay in XLA: the
    # scatter needs element-offset writes across M-tile boundaries that a
    # BlockSpec index_map cannot express; it is a cheap fused elementwise pass.
    out = jnp.tanh(o4)
    return jnp.transpose(out, (0, 3, 1, 2))                    # NHWC -> NCHW once


# --------------------- pure-JAX reference (sanity check) --------------------

def _conv_t_ref(x, w, stride, pad):
    wt = jnp.transpose(w[:, :, ::-1, ::-1], (1, 0, 2, 3))
    return jax.lax.conv_general_dilated(
        x, wt, window_strides=(1, 1),
        padding=[(K - 1 - pad, K - 1 - pad)] * 2,
        lhs_dilation=(stride, stride),
        dimension_numbers=("NCHW", "OIHW", "NCHW"))


def _bn_relu_ref(y, gamma, beta):
    m = y.mean(axis=(0, 2, 3), keepdims=True)
    v = ((y - m) ** 2).mean(axis=(0, 2, 3), keepdims=True)
    yn = (y - m) * jax.lax.rsqrt(v + EPS)
    yn = yn * gamma.reshape(1, -1, 1, 1) + beta.reshape(1, -1, 1, 1)
    return jnp.maximum(yn, 0.0)


def generator_ref(noise, labels, p):
    x = jnp.concatenate([noise, labels], axis=1)
    x = _bn_relu_ref(_conv_t_ref(x, p["w1"], 1, 0), p["g1"], p["b1"])
    x = _bn_relu_ref(_conv_t_ref(x, p["w2"], 2, 1), p["g2"], p["b2"])
    x = _bn_relu_ref(_conv_t_ref(x, p["w3"], 2, 1), p["g3"], p["b3"])
    return jnp.tanh(_conv_t_ref(x, p["w4"], 2, 1))


if __name__ == "__main__":
    latent_dim, n_classes, ngf, channels, batch = 8, 4, 8, 3, 2

    key = jax.random.PRNGKey(0)
    k_noise, k_labels, k_params = jax.random.split(key, 3)

    noise = jax.random.normal(k_noise, (batch, latent_dim, 1, 1), jnp.float32)
    labels = jax.nn.one_hot(
        jax.random.randint(k_labels, (batch,), 0, n_classes), n_classes
    ).reshape(batch, n_classes, 1, 1).astype(jnp.float32)

    params = init_params(k_params, latent_dim, n_classes, ngf, channels)

    fwd = jax.jit(generator_forward)
    out = jax.block_until_ready(fwd(noise, labels, params))
    assert out.shape == (batch, channels, 32, 32), out.shape

    ref = jax.block_until_ready(generator_ref(noise, labels, params))
    np.testing.assert_allclose(np.asarray(out), np.asarray(ref), atol=5e-2, rtol=5e-2)

    print("KERNEL_OK")
</pallas_src>

<mosaic_0001>
module attributes {stable_mosaic.version = 11 : i64} {
  func.func @_stats_kernel(%arg0: i32, %arg1: memref<32x32xf32, #tpu.memory_space<vmem>>, %arg2: memref<2x32xf32, #tpu.memory_space<vmem>>) attributes {dimension_semantics = [#tpu.dimension_semantics<arbitrary>], iteration_bounds = array<i64: 1>, scalar_prefetch = 0 : i64, scratch_operands = 0 : i64, tpu.core_type = #tpu.core_type<tc>, window_params = [{transform_indices = @transform_0, window_bounds = array<i64: 32, 32>}, {pipeline_mode = #tpu.pipeline_mode<synchronous>, transform_indices = @transform_1, window_bounds = array<i64: 2, 32>}]} {
    %c0_i32 = arith.constant 0 : i32
    %0 = arith.cmpi eq, %arg0, %c0_i32 : i32
    %1 = arith.extui %0 : i1 to i32
    %c0_i32_0 = arith.constant 0 : i32
    %2 = arith.cmpi ne, %1, %c0_i32_0 : i32
    scf.if %2 {
      %cst_7 = arith.constant 0.000000e+00 : f32
      %13 = vector.broadcast %cst_7 : f32 to vector<2x32xf32>
      %c0_8 = arith.constant 0 : index
      %c0_9 = arith.constant 0 : index
      %14 = vector.load %arg2[%c0_8, %c0_9] : memref<2x32xf32, #tpu.memory_space<vmem>>, vector<2x32xf32>
      tpu.vector_store %arg2[%c0_8, %c0_9], %13 {strides = array<i32>} : memref<2x32xf32, #tpu.memory_space<vmem>>, vector<2x32xf32>,
    } else {
    }
    %c0 = arith.constant 0 : index
    %c0_1 = arith.constant 0 : index
    %3 = vector.load %arg1[%c0, %c0_1] : memref<32x32xf32, #tpu.memory_space<vmem>>, vector<32x32xf32>
    %cst = arith.constant dense<0.000000e+00> : vector<32xf32>
    %4 = vector.multi_reduction <add>, %3, %cst [0] : vector<32x32xf32> to vector<32xf32>
    %5 = vector.shape_cast %4 : vector<32xf32> to vector<1x32xf32>
    %6 = arith.mulf %3, %3 : vector<32x32xf32>
    %cst_2 = arith.constant dense<0.000000e+00> : vector<32xf32>
    %7 = vector.multi_reduction <add>, %6, %cst_2 [0] : vector<32x32xf32> to vector<32xf32>
    %8 = vector.shape_cast %7 : vector<32xf32> to vector<1x32xf32>
    %c0_3 = arith.constant 0 : index
    %c0_4 = arith.constant 0 : index
    %9 = vector.load %arg2[%c0_3, %c0_4] : memref<2x32xf32, #tpu.memory_space<vmem>>, vector<2x32xf32>
    %10 = tpu.concatenate %5, %8 in 0 : vector<1x32xf32>, vector<1x32xf32> -> vector<2x32xf32>
    %11 = arith.addf %9, %10 : vector<2x32xf32>
    %c0_5 = arith.constant 0 : index
    %c0_6 = arith.constant 0 : index
    %12 = vector.load %arg2[%c0_5, %c0_6] : memref<2x32xf32, #tpu.memory_space<vmem>>, vector<2x32xf32>
    tpu.vector_store %arg2[%c0_5, %c0_6], %11 {strides = array<i32>} : memref<2x32xf32, #tpu.memory_space<vmem>>, vector<2x32xf32>,
    return
  }
  func.func @transform_0(%arg0: i32) -> (i32, i32) {
    %c0_i32 = arith.constant 0 : i32
    %c0_i32_0 = arith.constant 0 : i32
    return %arg0, %c0_i32 : i32, i32
  }
  func.func @transform_1(%arg0: i32) -> (i32, i32) {
    %c0_i32 = arith.constant 0 : i32
    %c0_i32_0 = arith.constant 0 : i32
    %c0_i32_1 = arith.constant 0 : i32
    return %c0_i32, %c0_i32_0 : i32, i32
  }
}

module attributes {stable_mosaic.version = 11 : i64} {
  func.func @_gemm_kernel(%arg0: i32, %arg1: memref<8x16xf32, #tpu.memory_space<vmem>>, %arg2: memref<16x512xbf16, #tpu.memory_space<vmem>>, %arg3: memref<8x512xf32, #tpu.memory_space<vmem>>) attributes {dimension_semantics = [#tpu.dimension_semantics<parallel>], iteration_bounds = array<i64: 1>, scalar_prefetch = 0 : i64, scratch_operands = 0 : i64, tpu.core_type = #tpu.core_type<tc>, window_params = [{transform_indices = @transform_0, window_bounds = array<i64: 8, 16>}, {pipeline_mode = #tpu.pipeline_mode<synchronous>, transform_indices = @transform_1, window_bounds = array<i64: 16, 512>}, {transform_indices = @transform_2, window_bounds = array<i64: 8, 512>}]} {
    %c0 = arith.constant 0 : index
    %c0_0 = arith.constant 0 : index
    %0 = vector.load %arg1[%c0, %c0_0] : memref<8x16xf32, #tpu.memory_space<vmem>>, vector<8x16xf32>
    %1 = arith.truncf %0 : vector<8x16xf32> to vector<8x16xbf16>
    %c0_1 = arith.constant 0 : index
    %c0_2 = arith.constant 0 : index
    %2 = vector.load %arg2[%c0_1, %c0_2] : memref<16x512xbf16, #tpu.memory_space<vmem>>, vector<16x512xbf16>
    %cst = arith.constant dense<0.000000e+00> : vector<8x512xf32>
    %3 = tpu.matmul %1, %2, %cst {dimension_numbers = #tpu.dot_dimension_numbers<[1], [0], [0], [1], [0, 0, 1, 1], [], []>} : vector<8x16xbf16>, vector<16x512xbf16>, vector<8x512xf32> -> vector<8x512xf32>
    %c0_3 = arith.constant 0 : index
    %c0_4 = arith.constant 0 : index
    %4 = vector.load %arg3[%c0_3, %c0_4] : memref<8x512xf32, #tpu.memory_space<vmem>>, vector<8x512xf32>
    tpu.vector_store %arg3[%c0_3, %c0_4], %3 {strides = array<i32>} : memref<8x512xf32, #tpu.memory_space<vmem>>, vector<8x512xf32>,
    return
  }
  func.func @transform_0(%arg0: i32) -> (i32, i32) {
    %c0_i32 = arith.constant 0 : i32
    %c0_i32_0 = arith.constant 0 : i32
    return %arg0, %c0_i32 : i32, i32
  }
  func.func @transform_1(%arg0: i32) -> (i32, i32) {
    %c0_i32 = arith.constant 0 : i32
    %c0_i32_0 = arith.constant 0 : i32
    %c0_i32_1 = arith.constant 0 : i32
    return %c0_i32, %c0_i32_0 : i32, i32
  }
  func.func @transform_2(%arg0: i32) -> (i32, i32) {
    %c0_i32 = arith.constant 0 : i32
    %c0_i32_0 = arith.constant 0 : i32
    return %arg0, %c0_i32 : i32, i32
  }
}

module attributes {stable_mosaic.version = 11 : i64} {
  func.func @_bn_relu_gemm_kernel(%arg0: i32, %arg1: memref<32x32xf32, #tpu.memory_space<vmem>>, %arg2: memref<1x32xf32, #tpu.memory_space<vmem>>, %arg3: memref<1x32xf32, #tpu.memory_space<vmem>>, %arg4: memref<32x256xbf16, #tpu.memory_space<vmem>>, %arg5: memref<32x256xf32, #tpu.memory_space<vmem>>) attributes {dimension_semantics = [#tpu.dimension_semantics<parallel>], iteration_bounds = array<i64: 1>, scalar_prefetch = 0 : i64, scratch_operands = 0 : i64, tpu.core_type = #tpu.core_type<tc>, window_params = [{transform_indices = @transform_0, window_bounds = array<i64: 32, 32>}, {pipeline_mode = #tpu.pipeline_mode<synchronous>, transform_indices = @transform_1, window_bounds = array<i64: 1, 32>}, {pipeline_mode = #tpu.pipeline_mode<synchronous>, transform_indices = @transform_2, window_bounds = array<i64: 1, 32>}, {pipeline_mode = #tpu.pipeline_mode<synchronous>, transform_indices = @transform_3, window_bounds = array<i64: 32, 256>}, {transform_indices = @transform_4, window_bounds = array<i64: 32, 256>}]} {
    %c0 = arith.constant 0 : index
    %c0_0 = arith.constant 0 : index
    %0 = vector.load %arg1[%c0, %c0_0] : memref<32x32xf32, #tpu.memory_space<vmem>>, vector<32x32xf32>
    %c0_1 = arith.constant 0 : index
    %c0_2 = arith.constant 0 : index
    %1 = vector.load %arg2[%c0_1, %c0_2] : memref<1x32xf32, #tpu.memory_space<vmem>>, vector<1x32xf32>
    %2 = vector.broadcast %1 : vector<1x32xf32> to vector<32x32xf32>
    %3 = arith.mulf %0, %2 : vector<32x32xf32>
    %c0_3 = arith.constant 0 : index
    %c0_4 = arith.constant 0 : index
    %4 = vector.load %arg3[%c0_3, %c0_4] : memref<1x32xf32, #tpu.memory_space<vmem>>, vector<1x32xf32>
    %5 = vector.broadcast %4 : vector<1x32xf32> to vector<32x32xf32>
    %6 = arith.addf %3, %5 : vector<32x32xf32>
    %cst = arith.constant 0.000000e+00 : f32
    %7 = vector.broadcast %cst : f32 to vector<32x32xf32>
    %8 = arith.maximumf %6, %7 : vector<32x32xf32>
    %9 = arith.truncf %8 : vector<32x32xf32> to vector<32x32xbf16>
    %c0_5 = arith.constant 0 : index
    %c0_6 = arith.constant 0 : index
    %10 = vector.load %arg4[%c0_5, %c0_6] : memref<32x256xbf16, #tpu.memory_space<vmem>>, vector<32x256xbf16>
    %cst_7 = arith.constant dense<0.000000e+00> : vector<32x256xf32>
    %11 = tpu.matmul %9, %10, %cst_7 {dimension_numbers = #tpu.dot_dimension_numbers<[1], [0], [0], [1], [0, 0, 1, 1], [], []>} : vector<32x32xbf16>, vector<32x256xbf16>, vector<32x256xf32> -> vector<32x256xf32>
    %c0_8 = arith.constant 0 : index
    %c0_9 = arith.constant 0 : index
    %12 = vector.load %arg5[%c0_8, %c0_9] : memref<32x256xf32, #tpu.memory_space<vmem>>, vector<32x256xf32>
    tpu.vector_store %arg5[%c0_8, %c0_9], %11 {strides = array<i32>} : memref<32x256xf32, #tpu.memory_space<vmem>>, vector<32x256xf32>,
    return
  }
  func.func @transform_0(%arg0: i32) -> (i32, i32) {
    %c0_i32 = arith.constant 0 : i32
    %c0_i32_0 = arith.constant 0 : i32
    return %arg0, %c0_i32 : i32, i32
  }
  func.func @transform_1(%arg0: i32) -> (i32, i32) {
    %c0_i32 = arith.constant 0 : i32
    %c0_i32_0 = arith.constant 0 : i32
    %c0_i32_1 = arith.constant 0 : i32
    return %c0_i32, %c0_i32_0 : i32, i32
  }
  func.func @transform_2(%arg0: i32) -> (i32, i32) {
    %c0_i32 = arith.constant 0 : i32
    %c0_i32_0 = arith.constant 0 : i32
    %c0_i32_1 = arith.constant 0 : i32
    return %c0_i32, %c0_i32_0 : i32, i32
  }
  func.func @transform_3(%arg0: i32) -> (i32, i32) {
    %c0_i32 = arith.constant 0 : i32
    %c0_i32_0 = arith.constant 0 : i32
    %c0_i32_1 = arith.constant 0 : i32
    return %c0_i32, %c0_i32_0 : i32, i32
  }
  func.func @transform_4(%arg0: i32) -> (i32, i32) {
    %c0_i32 = arith.constant 0 : i32
    %c0_i32_0 = arith.constant 0 : i32
    return %arg0, %c0_i32 : i32, i32
  }
}

module attributes {stable_mosaic.version = 11 : i64} {
  func.func @_stats_kernel(%arg0: i32, %arg1: memref<128x16xf32, #tpu.memory_space<vmem>>, %arg2: memref<2x16xf32, #tpu.memory_space<vmem>>) attributes {dimension_semantics = [#tpu.dimension_semantics<arbitrary>], iteration_bounds = array<i64: 1>, scalar_prefetch = 0 : i64, scratch_operands = 0 : i64, tpu.core_type = #tpu.core_type<tc>, window_params = [{transform_indices = @transform_0, window_bounds = array<i64: 128, 16>}, {pipeline_mode = #tpu.pipeline_mode<synchronous>, transform_indices = @transform_1, window_bounds = array<i64: 2, 16>}]} {
    %c0_i32 = arith.constant 0 : i32
    %0 = arith.cmpi eq, %arg0, %c0_i32 : i32
    %1 = arith.extui %0 : i1 to i32
    %c0_i32_0 = arith.constant 0 : i32
    %2 = arith.cmpi ne, %1, %c0_i32_0 : i32
    scf.if %2 {
      %cst_7 = arith.constant 0.000000e+00 : f32
      %13 = vector.broadcast %cst_7 : f32 to vector<2x16xf32>
      %c0_8 = arith.constant 0 : index
      %c0_9 = arith.constant 0 : index
      %14 = vector.load %arg2[%c0_8, %c0_9] : memref<2x16xf32, #tpu.memory_space<vmem>>, vector<2x16xf32>
      tpu.vector_store %arg2[%c0_8, %c0_9], %13 {strides = array<i32>} : memref<2x16xf32, #tpu.memory_space<vmem>>, vector<2x16xf32>,
    } else {
    }
    %c0 = arith.constant 0 : index
    %c0_1 = arith.constant 0 : index
    %3 = vector.load %arg1[%c0, %c0_1] : memref<128x16xf32, #tpu.memory_space<vmem>>, vector<128x16xf32>
    %cst = arith.constant dense<0.000000e+00> : vector<16xf32>
    %4 = vector.multi_reduction <add>, %3, %cst [0] : vector<128x16xf32> to vector<16xf32>
    %5 = vector.shape_cast %4 : vector<16xf32> to vector<1x16xf32>
    %6 = arith.mulf %3, %3 : vector<128x16xf32>
    %cst_2 = arith.constant dense<0.000000e+00> : vector<16xf32>
    %7 = vector.multi_reduction <add>, %6, %cst_2 [0] : vector<128x16xf32> to vector<16xf32>
    %8 = vector.shape_cast %7 : vector<16xf32> to vector<1x16xf32>
    %c0_3 = arith.constant 0 : index
    %c0_4 = arith.constant 0 : index
    %9 = vector.load %arg2[%c0_3, %c0_4] : memref<2x16xf32, #tpu.memory_space<vmem>>, vector<2x16xf32>
    %10 = tpu.concatenate %5, %8 in 0 : vector<1x16xf32>, vector<1x16xf32> -> vector<2x16xf32>
    %11 = arith.addf %9, %10 : vector<2x16xf32>
    %c0_5 = arith.constant 0 : index
    %c0_6 = arith.constant 0 : index
    %12 = vector.load %arg2[%c0_5, %c0_6] : memref<2x16xf32, #tpu.memory_space<vmem>>, vector<2x16xf32>
    tpu.vector_store %arg2[%c0_5, %c0_6], %11 {strides = array<i32>} : memref<2x16xf32, #tpu.memory_space<vmem>>, vector<2x16xf32>,
    return
  }
  func.func @transform_0(%arg0: i32) -> (i32, i32) {
    %c0_i32 = arith.constant 0 : i32
    %c0_i32_0 = arith.constant 0 : i32
    return %arg0, %c0_i32 : i32, i32
  }
  func.func @transform_1(%arg0: i32) -> (i32, i32) {
    %c0_i32 = arith.constant 0 : i32
    %c0_i32_0 = arith.constant 0 : i32
    %c0_i32_1 = arith.constant 0 : i32
    return %c0_i32, %c0_i32_0 : i32, i32
  }
}

module attributes {stable_mosaic.version = 11 : i64} {
  func.func @_bn_relu_gemm_kernel(%arg0: i32, %arg1: memref<128x16xf32, #tpu.memory_space<vmem>>, %arg2: memref<1x16xf32, #tpu.memory_space<vmem>>, %arg3: memref<1x16xf32, #tpu.memory_space<vmem>>, %arg4: memref<16x128xbf16, #tpu.memory_space<vmem>>, %arg5: memref<128x128xf32, #tpu.memory_space<vmem>>) attributes {dimension_semantics = [#tpu.dimension_semantics<parallel>], iteration_bounds = array<i64: 1>, scalar_prefetch = 0 : i64, scratch_operands = 0 : i64, tpu.core_type = #tpu.core_type<tc>, window_params = [{transform_indices = @transform_0, window_bounds = array<i64: 128, 16>}, {pipeline_mode = #tpu.pipeline_mode<synchronous>, transform_indices = @transform_1, window_bounds = array<i64: 1, 16>}, {pipeline_mode = #tpu.pipeline_mode<synchronous>, transform_indices = @transform_2, window_bounds = array<i64: 1, 16>}, {pipeline_mode = #tpu.pipeline_mode<synchronous>, transform_indices = @transform_3, window_bounds = array<i64: 16, 128>}, {transform_indices = @transform_4, window_bounds = array<i64: 128, 128>}]} {
    %c0 = arith.constant 0 : index
    %c0_0 = arith.constant 0 : index
    %0 = vector.load %arg1[%c0, %c0_0] : memref<128x16xf32, #tpu.memory_space<vmem>>, vector<128x16xf32>
    %c0_1 = arith.constant 0 : index
    %c0_2 = arith.constant 0 : index
    %1 = vector.load %arg2[%c0_1, %c0_2] : memref<1x16xf32, #tpu.memory_space<vmem>>, vector<1x16xf32>
    %2 = vector.broadcast %1 : vector<1x16xf32> to vector<128x16xf32>
    %3 = arith.mulf %0, %2 : vector<128x16xf32>
    %c0_3 = arith.constant 0 : index
    %c0_4 = arith.constant 0 : index
    %4 = vector.load %arg3[%c0_3, %c0_4] : memref<1x16xf32, #tpu.memory_space<vmem>>, vector<1x16xf32>
    %5 = vector.broadcast %4 : vector<1x16xf32> to vector<128x16xf32>
    %6 = arith.addf %3, %5 : vector<128x16xf32>
    %cst = arith.constant 0.000000e+00 : f32
    %7 = vector.broadcast %cst : f32 to vector<128x16xf32>
    %8 = arith.maximumf %6, %7 : vector<128x16xf32>
    %9 = arith.truncf %8 : vector<128x16xf32> to vector<128x16xbf16>
    %c0_5 = arith.constant 0 : index
    %c0_6 = arith.constant 0 : index
    %10 = vector.load %arg4[%c0_5, %c0_6] : memref<16x128xbf16, #tpu.memory_space<vmem>>, vector<16x128xbf16>
    %cst_7 = arith.constant dense<0.000000e+00> : vector<128x128xf32>
    %11 = tpu.matmul %9, %10, %cst_7 {dimension_numbers = #tpu.dot_dimension_numbers<[1], [0], [0], [1], [0, 0, 1, 1], [], []>} : vector<128x16xbf16>, vector<16x128xbf16>, vector<128x128xf32> -> vector<128x128xf32>
    %c0_8 = arith.constant 0 : index
    %c0_9 = arith.constant 0 : index
    %12 = vector.load %arg5[%c0_8, %c0_9] : memref<128x128xf32, #tpu.memory_space<vmem>>, vector<128x128xf32>
    tpu.vector_store %arg5[%c0_8, %c0_9], %11 {strides = array<i32>} : memref<128x128xf32, #tpu.memory_space<vmem>>, vector<128x128xf32>,
    return
  }
  func.func @transform_0(%arg0: i32) -> (i32, i32) {
    %c0_i32 = arith.constant 0 : i32
    %c0_i32_0 = arith.constant 0 : i32
    return %arg0, %c0_i32 : i32, i32
  }
  func.func @transform_1(%arg0: i32) -> (i32, i32) {
    %c0_i32 = arith.constant 0 : i32
    %c0_i32_0 = arith.constant 0 : i32
    %c0_i32_1 = arith.constant 0 : i32
    return %c0_i32, %c0_i32_0 : i32, i32
  }
  func.func @transform_2(%arg0: i32) -> (i32, i32) {
    %c0_i32 = arith.constant 0 : i32
    %c0_i32_0 = arith.constant 0 : i32
    %c0_i32_1 = arith.constant 0 : i32
    return %c0_i32, %c0_i32_0 : i32, i32
  }
  func.func @transform_3(%arg0: i32) -> (i32, i32) {
    %c0_i32 = arith.constant 0 : i32
    %c0_i32_0 = arith.constant 0 : i32
    %c0_i32_1 = arith.constant 0 : i32
    return %c0_i32, %c0_i32_0 : i32, i32
  }
  func.func @transform_4(%arg0: i32) -> (i32, i32) {
    %c0_i32 = arith.constant 0 : i32
    %c0_i32_0 = arith.constant 0 : i32
    return %arg0, %c0_i32 : i32, i32
  }
}

module attributes {stable_mosaic.version = 11 : i64} {
  func.func @_stats_kernel(%arg0: i32, %arg1: memref<512x8xf32, #tpu.memory_space<vmem>>, %arg2: memref<2x8xf32, #tpu.memory_space<vmem>>) attributes {dimension_semantics = [#tpu.dimension_semantics<arbitrary>], iteration_bounds = array<i64: 1>, scalar_prefetch = 0 : i64, scratch_operands = 0 : i64, tpu.core_type = #tpu.core_type<tc>, window_params = [{transform_indices = @transform_0, window_bounds = array<i64: 512, 8>}, {pipeline_mode = #tpu.pipeline_mode<synchronous>, transform_indices = @transform_1, window_bounds = array<i64: 2, 8>}]} {
    %c0_i32 = arith.constant 0 : i32
    %0 = arith.cmpi eq, %arg0, %c0_i32 : i32
    %1 = arith.extui %0 : i1 to i32
    %c0_i32_0 = arith.constant 0 : i32
    %2 = arith.cmpi ne, %1, %c0_i32_0 : i32
    scf.if %2 {
      %cst_7 = arith.constant 0.000000e+00 : f32
      %13 = vector.broadcast %cst_7 : f32 to vector<2x8xf32>
      %c0_8 = arith.constant 0 : index
      %c0_9 = arith.constant 0 : index
      %14 = vector.load %arg2[%c0_8, %c0_9] : memref<2x8xf32, #tpu.memory_space<vmem>>, vector<2x8xf32>
      tpu.vector_store %arg2[%c0_8, %c0_9], %13 {strides = array<i32>} : memref<2x8xf32, #tpu.memory_space<vmem>>, vector<2x8xf32>,
    } else {
    }
    %c0 = arith.constant 0 : index
    %c0_1 = arith.constant 0 : index
    %3 = vector.load %arg1[%c0, %c0_1] : memref<512x8xf32, #tpu.memory_space<vmem>>, vector<512x8xf32>
    %cst = arith.constant dense<0.000000e+00> : vector<8xf32>
    %4 = vector.multi_reduction <add>, %3, %cst [0] : vector<512x8xf32> to vector<8xf32>
    %5 = vector.shape_cast %4 : vector<8xf32> to vector<1x8xf32>
    %6 = arith.mulf %3, %3 : vector<512x8xf32>
    %cst_2 = arith.constant dense<0.000000e+00> : vector<8xf32>
    %7 = vector.multi_reduction <add>, %6, %cst_2 [0] : vector<512x8xf32> to vector<8xf32>
    %8 = vector.shape_cast %7 : vector<8xf32> to vector<1x8xf32>
    %c0_3 = arith.constant 0 : index
    %c0_4 = arith.constant 0 : index
    %9 = vector.load %arg2[%c0_3, %c0_4] : memref<2x8xf32, #tpu.memory_space<vmem>>, vector<2x8xf32>
    %10 = tpu.concatenate %5, %8 in 0 : vector<1x8xf32>, vector<1x8xf32> -> vector<2x8xf32>
    %11 = arith.addf %9, %10 : vector<2x8xf32>
    %c0_5 = arith.constant 0 : index
    %c0_6 = arith.constant 0 : index
    %12 = vector.load %arg2[%c0_5, %c0_6] : memref<2x8xf32, #tpu.memory_space<vmem>>, vector<2x8xf32>
    tpu.vector_store %arg2[%c0_5, %c0_6], %11 {strides = array<i32>} : memref<2x8xf32, #tpu.memory_space<vmem>>, vector<2x8xf32>,
    return
  }
  func.func @transform_0(%arg0: i32) -> (i32, i32) {
    %c0_i32 = arith.constant 0 : i32
    %c0_i32_0 = arith.constant 0 : i32
    return %arg0, %c0_i32 : i32, i32
  }
  func.func @transform_1(%arg0: i32) -> (i32, i32) {
    %c0_i32 = arith.constant 0 : i32
    %c0_i32_0 = arith.constant 0 : i32
    %c0_i32_1 = arith.constant 0 : i32
    return %c0_i32, %c0_i32_0 : i32, i32
  }
}

module attributes {stable_mosaic.version = 11 : i64} {
  func.func @_bn_relu_gemm_kernel(%arg0: i32, %arg1: memref<512x16xf32, #tpu.memory_space<vmem>>, %arg2: memref<1x16xf32, #tpu.memory_space<vmem>>, %arg3: memref<1x16xf32, #tpu.memory_space<vmem>>, %arg4: memref<16x48xbf16, #tpu.memory_space<vmem>>, %arg5: memref<512x48xf32, #tpu.memory_space<vmem>>) attributes {dimension_semantics = [#tpu.dimension_semantics<parallel>], iteration_bounds = array<i64: 1>, scalar_prefetch = 0 : i64, scratch_operands = 0 : i64, tpu.core_type = #tpu.core_type<tc>, window_params = [{transform_indices = @transform_0, window_bounds = array<i64: 512, 16>}, {pipeline_mode = #tpu.pipeline_mode<synchronous>, transform_indices = @transform_1, window_bounds = array<i64: 1, 16>}, {pipeline_mode = #tpu.pipeline_mode<synchronous>, transform_indices = @transform_2, window_bounds = array<i64: 1, 16>}, {pipeline_mode = #tpu.pipeline_mode<synchronous>, transform_indices = @transform_3, window_bounds = array<i64: 16, 48>}, {transform_indices = @transform_4, window_bounds = array<i64: 512, 48>}]} {
    %c0 = arith.constant 0 : index
    %c0_0 = arith.constant 0 : index
    %0 = vector.load %arg1[%c0, %c0_0] : memref<512x16xf32, #tpu.memory_space<vmem>>, vector<512x16xf32>
    %c0_1 = arith.constant 0 : index
    %c0_2 = arith.constant 0 : index
    %1 = vector.load %arg2[%c0_1, %c0_2] : memref<1x16xf32, #tpu.memory_space<vmem>>, vector<1x16xf32>
    %2 = vector.broadcast %1 : vector<1x16xf32> to vector<512x16xf32>
    %3 = arith.mulf %0, %2 : vector<512x16xf32>
    %c0_3 = arith.constant 0 : index
    %c0_4 = arith.constant 0 : index
    %4 = vector.load %arg3[%c0_3, %c0_4] : memref<1x16xf32, #tpu.memory_space<vmem>>, vector<1x16xf32>
    %5 = vector.broadcast %4 : vector<1x16xf32> to vector<512x16xf32>
    %6 = arith.addf %3, %5 : vector<512x16xf32>
    %cst = arith.constant 0.000000e+00 : f32
    %7 = vector.broadcast %cst : f32 to vector<512x16xf32>
    %8 = arith.maximumf %6, %7 : vector<512x16xf32>
    %9 = arith.truncf %8 : vector<512x16xf32> to vector<512x16xbf16>
    %c0_5 = arith.constant 0 : index
    %c0_6 = arith.constant 0 : index
    %10 = vector.load %arg4[%c0_5, %c0_6] : memref<16x48xbf16, #tpu.memory_space<vmem>>, vector<16x48xbf16>
    %cst_7 = arith.constant dense<0.000000e+00> : vector<512x48xf32>
    %11 = tpu.matmul %9, %10, %cst_7 {dimension_numbers = #tpu.dot_dimension_numbers<[1], [0], [0], [1], [0, 0, 1, 1], [], []>} : vector<512x16xbf16>, vector<16x48xbf16>, vector<512x48xf32> -> vector<512x48xf32>
    %c0_8 = arith.constant 0 : index
    %c0_9 = arith.constant 0 : index
    %12 = vector.load %arg5[%c0_8, %c0_9] : memref<512x48xf32, #tpu.memory_space<vmem>>, vector<512x48xf32>
    tpu.vector_store %arg5[%c0_8, %c0_9], %11 {strides = array<i32>} : memref<512x48xf32, #tpu.memory_space<vmem>>, vector<512x48xf32>,
    return
  }
  func.func @transform_0(%arg0: i32) -> (i32, i32) {
    %c0_i32 = arith.constant 0 : i32
    %c0_i32_0 = arith.constant 0 : i32
    return %arg0, %c0_i32 : i32, i32
  }
  func.func @transform_1(%arg0: i32) -> (i32, i32) {
    %c0_i32 = arith.constant 0 : i32
    %c0_i32_0 = arith.constant 0 : i32
    %c0_i32_1 = arith.constant 0 : i32
    return %c0_i32, %c0_i32_0 : i32, i32
  }
  func.func @transform_2(%arg0: i32) -> (i32, i32) {
    %c0_i32 = arith.constant 0 : i32
    %c0_i32_0 = arith.constant 0 : i32
    %c0_i32_1 = arith.constant 0 : i32
    return %c0_i32, %c0_i32_0 : i32, i32
  }
  func.func @transform_3(%arg0: i32) -> (i32, i32) {
    %c0_i32 = arith.constant 0 : i32
    %c0_i32_0 = arith.constant 0 : i32
    %c0_i32_1 = arith.constant 0 : i32
    return %c0_i32, %c0_i32_0 : i32, i32
  }
  func.func @transform_4(%arg0: i32) -> (i32, i32) {
    %c0_i32 = arith.constant 0 : i32
    %c0_i32_0 = arith.constant 0 : i32
    return %arg0, %c0_i32 : i32, i32
  }
}

</mosaic_0001>

<bundles_post_ra>
// kernel: generator_forward.8
= control target key start
LH: loop header
LB: loop body
LE: loop exit
PB: predicated region body
PF: predicated region fallthrough
CT: control target
= control target key end

     0   :  { %vm12_vm0 = vcmask 254976   ;;  %vm18_vm1 = vcmask 261120   ;;  %v60_v0 = vmov 0.0   ;;  %vm50_vm2 = vcmask 1040384   ;;  %s102_s0 = inlined_call_operand.vmem [shape: f32[32,32], index: 0, kind: input, shape index: {}]   ;;  %s103_s1 = inlined_call_operand.vmem [shape: f32[2,32], index: 1, kind: output, shape index: {}]  }
   0x1   :  { %13 = vst.msk [vmem:[%s103_s1] sm:$0x3] %vm12_vm0, %v60_v0  ;;  %v14_v1 = vld [vmem:[%s102_s0] sm:$0xff]  ;;  %v15_v2 = vld [vmem:[%s102_s0 + $0x8] sm:$0xff]  ;;  %v16_v3 = vld [vmem:[%s102_s0 + $0x10] sm:$0xff] }
   0x2   :  { %v17_v4 = vld [vmem:[%s102_s0 + $0x18] sm:$0xff]  ;;  %v19_v5 = vsel %vm18_vm1, %v14_v1, 0.0  ;;  %v20_v6 = vsel %vm18_vm1, %v15_v2, 0.0  ;;  %v22_v7 = vsel %vm18_vm1, %v16_v3, 0.0  ;;  %v32_v8 = vmul.f32 %v14_v1, %v14_v1 }
   0x3   :  { %v21_v9 = vadd.f32 %v20_v6, %v19_v5  ;;  %v33_v10 = vmul.f32 %v15_v2, %v15_v2  ;;  %v34_v11 = vmul.f32 %v16_v3, %v16_v3  ;;  %v24_v12 = vsel %vm18_vm1, %v17_v4, 0.0 }
   0x4   :  { %v35_v13 = vmul.f32 %v17_v4, %v17_v4  ;;  %v36_v14 = vsel %vm18_vm1, %v32_v8, 0.0 }
   0x5   :  { %v23_v15 = vadd.f32 %v22_v7, %v21_v9  ;;  %v37_v16 = vsel %vm18_vm1, %v33_v10, 0.0  ;;  %v39_v17 = vsel %vm18_vm1, %v34_v11, 0.0 }
   0x6   :  { %v38_v18 = vadd.f32 %v37_v16, %v36_v14  ;;  %v41_v20 = vsel %vm18_vm1, %v35_v13, 0.0 }
   0x7   :  { %v25_v19 = vadd.f32 %v24_v12, %v23_v15 }
   0x8   :  { %v40_v21 = vadd.f32 %v39_v17, %v38_v18  ;;  %v49_v35 = vld [vmem:[%s103_s1] sm:$0x3] }
   0x9   :  { %v26_v22 = vrot.slane %v25_v19, 4 }
   0xa   :  { %v42_v23 = vadd.f32 %v41_v20, %v40_v21 }
   0xb   :  { %v27_v24 = vadd.f32 %v26_v22, %v25_v19 }
   0xc   :  { %v43_v25 = vrot.slane %v42_v23, 4 }
   0xd   :  { %v28_v26 = vrot.slane %v27_v24, 2 }
   0xe   :  { %v44_v27 = vadd.f32 %v43_v25, %v42_v23 }
   0xf   :  { %v29_v28 = vadd.f32 %v28_v26, %v27_v24 }
  0x10   :  { %v45_v29 = vrot.slane %v44_v27, 2 }
  0x11   :  { %v30_v30 = vrot.slane %v29_v28, 1 }
  0x12   :  { %v46_v31 = vadd.f32 %v45_v29, %v44_v27 }
  0x13   :  { %v31_v32 = vadd.f32 %v30_v30, %v29_v28 }
  0x14   :  { %v47_v33 = vrot.slane %v46_v31, 1 }
  0x16   :  { %v48_v34 = vadd.f32 %v47_v33, %v46_v31 }
  0x18   :  { %v51_v36 = vsel %vm50_vm2, %v31_v32, %v48_v34 }
  0x19   :  { %v52_v37 = vadd.f32 %v51_v36, %v49_v35 }
  0x1b   :  { %54 = vst.msk [vmem:[%s103_s1] sm:$0x3] %vm12_vm0, %v52_v37 }

// kernel: generator_forward.9
= control target key start
LH: loop header
LB: loop body
LE: loop exit
PB: predicated region body
PF: predicated region fallthrough
CT: control target
= control target key end

     0   :  { %v165_v1 = vmov 0   ;;  %vm74_vm0 = vcmask 261120   ;;  %s245_s3 = inlined_call_operand.vmem [shape: bf16[32,256], index: 3, kind: input, shape index: {}]   ;;  %s246_s0 = inlined_call_operand.vmem [shape: f32[32,32], index: 0, kind: input, shape index: {}]   ;;  %s247_s1 = inlined_call_operand.vmem [shape: f32[1,32], index: 1, kind: input, shape index: {}]   ;;  %s248_s2 = inlined_call_operand.vmem [shape: f32[1,32], index: 2, kind: input, shape index: {}]   ;;  %s249_s4 = inlined_call_operand.vmem [shape: f32[32,256], index: 4, kind: output, shape index: {}]  }
   0x1   :  { %v159_v0 = vld [vmem:[%s245_s3 + $0x4] ss:$8 sps:$4 sm:$0xff]   ;;  %113 = vmatprep.mubr.bf16.mxu0 %v165_v1  ;;  %123 = vmatprep.mubr.bf16.mxu1 %v165_v1  ;;  %v161_v2 = vld [vmem:[%s245_s3] ss:$8 sps:$4 sm:$0xff]   ;;  %v162_v3 = vld [vmem:[%s245_s3 + $0x14] ss:$8 sps:$4 sm:$0xff]  }
   0x2   :  { %81 = vmatprep.subr.bf16.mxu0 %v159_v0  ;;  %154 = vmatprep.subr.bf16.mxu1 %v159_v0  ;;  %v164_v4 = vld [vmem:[%s245_s3 + $0x10] ss:$8 sps:$4 sm:$0xff]   ;;  %v18_v5 = vld [vmem:[%s246_s0] sm:$0xff]  ;;  %v19_v6 = vld [vmem:[%s246_s0 + $0x8] sm:$0xff] }
   0x3   :  { %82 = vmatpush1.bf16.msra.mxu0 %v161_v2  ;;  %156 = vmatpush1.bf16.msra.mxu1 %v161_v2  ;;  %v146_v7 = vld [vmem:[%s247_s1] ss:$0 sm:$0xff]  ;;  %v20_v11 = vld [vmem:[%s246_s0 + $0x10] sm:$0xff]  ;;  %v21_v12 = vld [vmem:[%s246_s0 + $0x18] sm:$0xff] }
   0x4   :  { %v147_v8 = vld [vmem:[%s248_s2] ss:$0 sm:$0xff]  ;;  %83 = vmatprep.subr.bf16.mxu0 %v162_v3  ;;  %155 = vmatprep.subr.bf16.mxu1 %v162_v3  ;;  %v29_v9 = vmul.f32 %v146_v7, %v18_v5  ;;  %v30_v10 = vmul.f32 %v146_v7, %v19_v6  ;;  %v31_v13 = vmul.f32 %v146_v7, %v20_v11 }
   0x5   :  { %v32_v14 = vmul.f32 %v146_v7, %v21_v12 }
   0x6   :  { %v40_v15 = vadd.f32 %v147_v8, %v29_v9  ;;  %v41_v16 = vadd.f32 %v147_v8, %v30_v10  ;;  %v42_v17 = vadd.f32 %v147_v8, %v31_v13 }
   0x7   :  { %84 = vmatpush1.bf16.msra.mxu0 %v164_v4  ;;  %157 = vmatpush1.bf16.msra.mxu1 %v164_v4  ;;  %v43_v18 = vadd.f32 %v147_v8, %v32_v14 }
   0x8   :  { %v44_v19 = vmax.f32 %v40_v15, 0.0  ;;  %v45_v20 = vmax.f32 %v41_v16, 0.0  ;;  %v46_v21 = vmax.f32 %v42_v17, 0.0 }
   0x9   :  { %v47_v22 = vmax.f32 %v43_v18, 0.0 }
   0xa   :  { %v48_v23 = vpack.c.bf16 %v45_v20, %v44_v19 }
   0xb   :  { %v49_v24 = vpack.c.bf16 %v47_v22, %v46_v21 }
   0xc   :  { %152 = vmatmul.mubr.msk.bf16.vlgmr.msra.gmra.mrb[0].mxu0 %vm74_vm0, %v48_v23 }
   0xd   :  { %153 = vmatmul.mubr.msk.bf16.vlgmr.msra.gmra.mrb[0].mxu1 %vm74_vm0, %v49_v24 }
  0xdf   :  { %v115_v25 = vpop.f32.mrb[0].mxu0 }
  0xe0   :  { %134 = vst [vmem:[%s249_s4] sm:$0xff] %v115_v25  ;;  %v125_v26 = vpop.f32.mrb[0].mxu1  ;;  %v117_v27 = vpop.f32.mrb[1].mxu0 }
  0xe1   :  { %138 = vst [vmem:[%s249_s4 + $0x20] sm:$0xff] %v125_v26  ;;  %135 = vst [vmem:[%s249_s4 + $0x8] sm:$0xff] %v117_v27  ;;  %v127_v28 = vpop.f32.mrb[1].mxu1  ;;  %v119_v29 = vpop.f32.mrb[2].mxu0 }
  0xe2   :  { %139 = vst [vmem:[%s249_s4 + $0x28] sm:$0xff] %v127_v28  ;;  %136 = vst [vmem:[%s249_s4 + $0x10] sm:$0xff] %v119_v29  ;;  %v129_v30 = vpop.f32.mrb[2].mxu1  ;;  %v121_v31 = vpop.f32.mrb[3].mxu0 }
  0xe3   :  { %140 = vst [vmem:[%s249_s4 + $0x30] sm:$0xff] %v129_v30  ;;  %137 = vst [vmem:[%s249_s4 + $0x18] sm:$0xff] %v121_v31  ;;  %v131_v32 = vpop.f32.mrb[3].mxu1 }
  0xe4   :  { %141 = vst [vmem:[%s249_s4 + $0x38] sm:$0xff] %v131_v32 }

// kernel: generator_forward.7
= control target key start
LH: loop header
LB: loop body
LE: loop exit
PB: predicated region body
PF: predicated region fallthrough
CT: control target
= control target key end

     0   :  { %v145_v1 = vmov 0   ;;  %vm38_vm0 = vcmask 130048   ;;  %s188_s1 = inlined_call_operand.vmem [shape: bf16[16,512], index: 1, kind: input, shape index: {}]   ;;  %s189_s0 = inlined_call_operand.vmem [shape: f32[8,16], index: 0, kind: input, shape index: {}]   ;;  %s190_s2 = inlined_call_operand.vmem [shape: f32[8,512], index: 2, kind: output, shape index: {}]  }
   0x1   :  { %v139_v0 = vld [vmem:[%s188_s1 + $0x4] ss:$16 sps:$4 sm:$0xff]   ;;  %74 = vmatprep.mubr.bf16.mxu0 %v145_v1  ;;  %115 = vmatprep.mubr.bf16.mxu1 %v145_v1  ;;  %v141_v2 = vld [vmem:[%s188_s1 + $0xc] ss:$16 sps:$4 sm:$0xff]   ;;  %v143_v3 = vld [vmem:[%s188_s1] ss:$16 sps:$4 sm:$0xff]  }
   0x2   :  { %42 = vmatprep.subr.bf16.mxu0 %v139_v0  ;;  %v144_v4 = vld [vmem:[%s188_s1 + $0x8] ss:$16 sps:$4 sm:$0xff]   ;;  %v12_v5 = vld [vmem:[%s189_s0] sm:$0xff]  ;;  %83 = vmatprep.subr.bf16.mxu1 %v141_v2 }
   0x3   :  { %v13_v6 = vpack.c.bf16 %v12_v5, %v12_v5  ;;  %43 = vmatpush1.bf16.msra.mxu0 %v143_v3  ;;  %84 = vmatpush1.bf16.msra.mxu1 %v144_v4 }
   0x6   :  { %136 = vmatmul.mubr.msk.bf16.vlgmr.msra.gmra.mrb[0].mxu0 %vm38_vm0, %v13_v6  ;;  %137 = vmatmul.mubr.msk.bf16.vlgmr.msra.gmra.mrb[0].mxu1 %vm38_vm0, %v13_v6 }
  0xd9   :  { %v76_v7 = vpop.f32.mrb[0].mxu0  ;;  %v117_v8 = vpop.f32.mrb[0].mxu1 }
  0xda   :  { %124 = vst [vmem:[%s190_s2] sm:$0xff] %v76_v7  ;;  %126 = vst [vmem:[%s190_s2 + $0x10] sm:$0xff] %v117_v8  ;;  %v78_v9 = vpop.f32.mrb[1].mxu0  ;;  %v119_v10 = vpop.f32.mrb[1].mxu1 }
  0xdb   :  { %125 = vst [vmem:[%s190_s2 + $0x8] sm:$0xff] %v78_v9  ;;  %127 = vst [vmem:[%s190_s2 + $0x18] sm:$0xff] %v119_v10  ;;  %v80_v11 = vpop.f32.mrb[2].mxu0  ;;  %v121_v12 = vpop.f32.mrb[2].mxu1 }
  0xdc   :  { %v81_v13 = vpop.f32.mrb[3].mxu0  ;;  %v122_v14 = vpop.f32.mrb[3].mxu1 }

// kernel: generator_forward.10
= control target key start
LH: loop header
LB: loop body
LE: loop exit
PB: predicated region body
PF: predicated region fallthrough
CT: control target
= control target key end

     0   :  { %vm12_vm0 = vcmask 123904   ;;  %vm30_vm1 = vcmask 130048   ;;  %v132_v0 = vmov 0.0   ;;  %vm122_vm2 = vcmask 1040384   ;;  %s234_s0 = inlined_call_operand.vmem [shape: f32[128,16], index: 0, kind: input, shape index: {}]   ;;  %s235_s1 = inlined_call_operand.vmem [shape: f32[2,16], index: 1, kind: output, shape index: {}]  }
   0x1   :  { %13 = vst.msk [vmem:[%s235_s1] sm:$0x3] %vm12_vm0, %v132_v0  ;;  %v14_v1 = vld [vmem:[%s234_s0] sm:$0xff]  ;;  %v15_v2 = vld [vmem:[%s234_s0 + $0x8] sm:$0xff]  ;;  %v16_v3 = vld [vmem:[%s234_s0 + $0x10] sm:$0xff] }
   0x2   :  { %v31_v4 = vsel %vm30_vm1, %v14_v1, 0.0  ;;  %v32_v5 = vsel %vm30_vm1, %v15_v2, 0.0  ;;  %v34_v6 = vsel %vm30_vm1, %v16_v3, 0.0  ;;  %v17_v7 = vld [vmem:[%s234_s0 + $0x18] sm:$0xff]  ;;  %v18_v10 = vld [vmem:[%s234_s0 + $0x20] sm:$0xff]  ;;  %v19_v13 = vld [vmem:[%s234_s0 + $0x28] sm:$0xff]  ;;  %v68_v15 = vmul.f32 %v14_v1, %v14_v1 }
   0x3   :  { %v33_v8 = vadd.f32 %v32_v5, %v31_v4  ;;  %v36_v9 = vsel %vm30_vm1, %v17_v7, 0.0  ;;  %v38_v12 = vsel %vm30_vm1, %v18_v10, 0.0  ;;  %v69_v16 = vmul.f32 %v15_v2, %v15_v2  ;;  %v20_v19 = vld [vmem:[%s234_s0 + $0x30] sm:$0xff]  ;;  %v21_v24 = vld [vmem:[%s234_s0 + $0x38] sm:$0xff]  ;;  %v22_v31 = vld [vmem:[%s234_s0 + $0x40] sm:$0xff] }
   0x4   :  { %v70_v17 = vmul.f32 %v16_v3, %v16_v3  ;;  %v40_v18 = vsel %vm30_vm1, %v19_v13, 0.0  ;;  %v71_v21 = vmul.f32 %v17_v7, %v17_v7  ;;  %v42_v22 = vsel %vm30_vm1, %v20_v19, 0.0  ;;  %v23_v37 = vld [vmem:[%s234_s0 + $0x48] sm:$0xff]  ;;  %v24_v43 = vld [vmem:[%s234_s0 + $0x50] sm:$0xff]  ;;  %v25_v49 = vld [vmem:[%s234_s0 + $0x58] sm:$0xff] }
   0x5   :  { %v35_v11 = vadd.f32 %v34_v6, %v33_v8  ;;  %v72_v23 = vmul.f32 %v18_v10, %v18_v10  ;;  %v84_v26 = vsel %vm30_vm1, %v68_v15, 0.0  ;;  %v85_v27 = vsel %vm30_vm1, %v69_v16, 0.0  ;;  %v26_v55 = vld [vmem:[%s234_s0 + $0x60] sm:$0xff]  ;;  %v27_v61 = vld [vmem:[%s234_s0 + $0x68] sm:$0xff]  ;;  %v28_v3 = vld [vmem:[%s234_s0 + $0x70] sm:$0xff] }
   0x6   :  { %v87_v28 = vsel %vm30_vm1, %v70_v17, 0.0  ;;  %v44_v29 = vsel %vm30_vm1, %v21_v24, 0.0  ;;  %v86_v30 = vadd.f32 %v85_v27, %v84_v26  ;;  %v73_v33 = vmul.f32 %v19_v13, %v19_v13 }
   0x7   :  { %v37_v14 = vadd.f32 %v36_v9, %v35_v11  ;;  %v89_v34 = vsel %vm30_vm1, %v71_v21, 0.0  ;;  %v46_v35 = vsel %vm30_vm1, %v22_v31, 0.0  ;;  %v74_v39 = vmul.f32 %v20_v19, %v20_v19  ;;  %v29_v9 = vld [vmem:[%s234_s0 + $0x78] sm:$0xff] }
   0x8   :  { %v88_v36 = vadd.f32 %v87_v28, %v86_v30  ;;  %v91_v40 = vsel %vm30_vm1, %v72_v23, 0.0  ;;  %v48_v41 = vsel %vm30_vm1, %v23_v37, 0.0  ;;  %v75_v45 = vmul.f32 %v21_v24, %v21_v24 }
   0x9   :  { %v39_v20 = vadd.f32 %v38_v12, %v37_v14  ;;  %v93_v46 = vsel %vm30_vm1, %v73_v33, 0.0  ;;  %v50_v47 = vsel %vm30_vm1, %v24_v43, 0.0  ;;  %v76_v51 = vmul.f32 %v22_v31, %v22_v31 }
   0xa   :  { %v90_v42 = vadd.f32 %v89_v34, %v88_v36  ;;  %v95_v52 = vsel %vm30_vm1, %v74_v39, 0.0  ;;  %v52_v53 = vsel %vm30_vm1, %v25_v49, 0.0  ;;  %v77_v57 = vmul.f32 %v23_v37, %v23_v37 }
   0xb   :  { %v41_v25 = vadd.f32 %v40_v18, %v39_v20  ;;  %v97_v58 = vsel %vm30_vm1, %v75_v45, 0.0  ;;  %v54_v59 = vsel %vm30_vm1, %v26_v55, 0.0  ;;  %v78_v63 = vmul.f32 %v24_v43, %v24_v43  ;;  %v121_v43 = vld [vmem:[%s235_s1] sm:$0x3] }
   0xc   :  { %v92_v48 = vadd.f32 %v91_v40, %v90_v42  ;;  %v99_v0 = vsel %vm30_vm1, %v76_v51, 0.0  ;;  %v56_v1 = vsel %vm30_vm1, %v27_v61, 0.0  ;;  %v79_v5 = vmul.f32 %v25_v49, %v25_v49 }
   0xd   :  { %v43_v32 = vadd.f32 %v42_v22, %v41_v25  ;;  %v101_v6 = vsel %vm30_vm1, %v77_v57, 0.0  ;;  %v58_v7 = vsel %vm30_vm1, %v28_v3, 0.0  ;;  %v80_v11 = vmul.f32 %v26_v55, %v26_v55 }
   0xe   :  { %v94_v54 = vadd.f32 %v93_v46, %v92_v48  ;;  %v103_v12 = vsel %vm30_vm1, %v78_v63, 0.0  ;;  %v60_v13 = vsel %vm30_vm1, %v29_v9, 0.0  ;;  %v81_v16 = vmul.f32 %v27_v61, %v27_v61 }
   0xf   :  { %v45_v38 = vadd.f32 %v44_v29, %v43_v32  ;;  %v105_v17 = vsel %vm30_vm1, %v79_v5, 0.0  ;;  %v82_v20 = vmul.f32 %v28_v3, %v28_v3  ;;  %v107_v21 = vsel %vm30_vm1, %v80_v11, 0.0 }
  0x10   :  { %v96_v60 = vadd.f32 %v95_v52, %v94_v54  ;;  %v83_v24 = vmul.f32 %v29_v9, %v29_v9  ;;  %v109_v25 = vsel %vm30_vm1, %v81_v16, 0.0 }
  0x11   :  { %v47_v44 = vadd.f32 %v46_v35, %v45_v38  ;;  %v111_v28 = vsel %vm30_vm1, %v82_v20, 0.0 }
  0x12   :  { %v98_v2 = vadd.f32 %v97_v58, %v96_v60  ;;  %v113_v30 = vsel %vm30_vm1, %v83_v24, 0.0 }
  0x13   :  { %v49_v50 = vadd.f32 %v48_v41, %v47_v44 }
  0x14   :  { %v100_v8 = vadd.f32 %v99_v0, %v98_v2 }
  0x15   :  { %v51_v56 = vadd.f32 %v50_v47, %v49_v50 }
  0x16   :  { %v102_v14 = vadd.f32 %v101_v6, %v100_v8 }
  0x17   :  { %v53_v62 = vadd.f32 %v52_v53, %v51_v56 }
  0x18   :  { %v104_v18 = vadd.f32 %v103_v12, %v102_v14 }
  0x19   :  { %v55_v4 = vadd.f32 %v54_v59, %v53_v62 }
  0x1a   :  { %v106_v22 = vadd.f32 %v105_v17, %v104_v18 }
  0x1b   :  { %v57_v10 = vadd.f32 %v56_v1, %v55_v4 }
  0x1c   :  { %v108_v26 = vadd.f32 %v107_v21, %v106_v22 }
  0x1d   :  { %v59_v15 = vadd.f32 %v58_v7, %v57_v10 }
  0x1e   :  { %v110_v29 = vadd.f32 %v109_v25, %v108_v26 }
  0x1f   :  { %v61_v19 = vadd.f32 %v60_v13, %v59_v15 }
  0x20   :  { %v112_v32 = vadd.f32 %v111_v28, %v110_v29 }
  0x21   :  { %v62_v23 = vrot.slane %v61_v19, 4 }
  0x22   :  { %v114_v33 = vadd.f32 %v113_v30, %v112_v32 }
  0x23   :  { %v63_v27 = vadd.f32 %v62_v23, %v61_v19 }
  0x24   :  { %v115_v35 = vrot.slane %v114_v33, 4 }
  0x25   :  { %v64_v31 = vrot.slane %v63_v27, 2 }
  0x26   :  { %v116_v36 = vadd.f32 %v115_v35, %v114_v33 }
  0x27   :  { %v65_v34 = vadd.f32 %v64_v31, %v63_v27 }
  0x28   :  { %v117_v38 = vrot.slane %v116_v36, 2 }
  0x29   :  { %v66_v37 = vrot.slane %v65_v34, 1 }
  0x2a   :  { %v118_v39 = vadd.f32 %v117_v38, %v116_v36 }
  0x2b   :  { %v67_v40 = vadd.f32 %v66_v37, %v65_v34 }
  0x2c   :  { %v119_v41 = vrot.slane %v118_v39, 1 }
  0x2e   :  { %v120_v42 = vadd.f32 %v119_v41, %v118_v39 }
  0x30   :  { %v123_v44 = vsel %vm122_vm2, %v67_v40, %v120_v42 }
  0x31   :  { %v124_v45 = vadd.f32 %v123_v44, %v121_v43 }
  0x33   :  { %126 = vst.msk [vmem:[%s235_s1] sm:$0x3] %vm12_vm0, %v124_v45 }

// kernel: generator_forward.11
= control target key start
LH: loop header
LB: loop body
LE: loop exit
PB: predicated region body
PF: predicated region fallthrough
CT: control target
= control target key end

     0   :  { %vm112_vm0 = vcmask 130048   ;;  %s469_s3 = inlined_call_operand.vmem [shape: bf16[16,128], index: 3, kind: input, shape index: {}]   ;;  %s470_s0 = inlined_call_operand.vmem [shape: f32[128,16], index: 0, kind: input, shape index: {}]   ;;  %s471_s1 = inlined_call_operand.vmem [shape: f32[1,16], index: 1, kind: input, shape index: {}]   ;;  %s472_s2 = inlined_call_operand.vmem [shape: f32[1,16], index: 2, kind: input, shape index: {}]   ;;  %s473_s4 = inlined_call_operand.vmem [shape: f32[128,128], index: 4, kind: output, shape index: {}]  }
   0x1   :  { %v294_v0 = vld [vmem:[%s469_s3] sm:$0xff]   ;;  %v19_v2 = vld [vmem:[%s470_s0 + $0x8] sm:$0xff]  ;;  %v20_v11 = vld [vmem:[%s470_s0 + $0x10] sm:$0xff] }
   0x2   :  { %v18_v1 = vld [vmem:[%s470_s0] sm:$0xff]  ;;  %274 = vmatprep.subr.bf16.mxu0 %v294_v0  ;;  %292 = vmatprep.subr.bf16.mxu1 %v294_v0  ;;  %v27_v8 = vld [vmem:[%s470_s0 + $0x48] sm:$0xff]  ;;  %v21_v12 = vld [vmem:[%s470_s0 + $0x18] sm:$0xff] }
   0x3   :  { %v332_v3 = vld [vmem:[%s471_s1] ss:$0 sm:$0xff]  ;;  %275 = vmatpush3.bf16.msra.mxu0 %v294_v0  ;;  %293 = vmatpush3.bf16.msra.mxu1 %v294_v0  ;;  %v28_v13 = vld [vmem:[%s470_s0 + $0x50] sm:$0xff]  ;;  %v29_v18 = vld [vmem:[%s470_s0 + $0x58] sm:$0xff] }
   0x4   :  { %v41_v4 = vmul.f32 %v332_v3, %v18_v1  ;;  %v42_v5 = vmul.f32 %v332_v3, %v19_v2  ;;  %v339_v6 = vld [vmem:[%s472_s2] ss:$0 sm:$0xff]  ;;  %v50_v10 = vmul.f32 %v332_v3, %v27_v8  ;;  %v43_v16 = vmul.f32 %v332_v3, %v20_v11  ;;  %v23_v28 = vld [vmem:[%s470_s0 + $0x28] sm:$0xff]  ;;  %v24_v39 = vld [vmem:[%s470_s0 + $0x30] sm:$0xff] }
   0x5   :  { %v26_v7 = vld [vmem:[%s470_s0 + $0x40] sm:$0xff]  ;;  %v44_v17 = vmul.f32 %v332_v3, %v21_v12  ;;  %v51_v21 = vmul.f32 %v332_v3, %v28_v13  ;;  %v52_v22 = vmul.f32 %v332_v3, %v29_v18  ;;  %v31_v34 = vld [vmem:[%s470_s0 + $0x68] sm:$0xff]  ;;  %v25_v40 = vld [vmem:[%s470_s0 + $0x38] sm:$0xff]  ;;  %v46_v44 = vmul.f32 %v332_v3, %v23_v28 }
   0x6   :  { %v49_v9 = vmul.f32 %v332_v3, %v26_v7  ;;  %v64_v14 = vadd.f32 %v339_v6, %v41_v4  ;;  %v65_v15 = vadd.f32 %v339_v6, %v42_v5  ;;  %v73_v20 = vadd.f32 %v339_v6, %v50_v10  ;;  %v22_v23 = vld [vmem:[%s470_s0 + $0x20] sm:$0xff]  ;;  %v32_v45 = vld [vmem:[%s470_s0 + $0x70] sm:$0xff]  ;;  %v33_v50 = vld [vmem:[%s470_s0 + $0x78] sm:$0xff] }
   0x7   :  { %v66_v26 = vadd.f32 %v339_v6, %v43_v16  ;;  %v67_v27 = vadd.f32 %v339_v6, %v44_v17  ;;  %v74_v31 = vadd.f32 %v339_v6, %v51_v21  ;;  %v75_v32 = vadd.f32 %v339_v6, %v52_v22  ;;  %v30_v33 = vld [vmem:[%s470_s0 + $0x60] sm:$0xff] }
   0x8   :  { %v72_v19 = vadd.f32 %v339_v6, %v49_v9  ;;  %v80_v24 = vmax.f32 %v64_v14, 0.0  ;;  %v81_v25 = vmax.f32 %v65_v15, 0.0  ;;  %v89_v30 = vmax.f32 %v73_v20, 0.0 }
   0x9   :  { %v82_v36 = vmax.f32 %v66_v26, 0.0  ;;  %v83_v37 = vmax.f32 %v67_v27, 0.0  ;;  %v45_v38 = vmul.f32 %v332_v3, %v22_v23  ;;  %v90_v42 = vmax.f32 %v74_v31, 0.0 }
   0xa   :  { %v88_v29 = vmax.f32 %v72_v19, 0.0  ;;  %v96_v35 = vpack.c.bf16 %v81_v25, %v80_v24  ;;  %v91_v43 = vmax.f32 %v75_v32, 0.0  ;;  %v53_v48 = vmul.f32 %v332_v3, %v30_v33 }
   0xb   :  { %v97_v46 = vpack.c.bf16 %v83_v37, %v82_v36  ;;  %v68_v47 = vadd.f32 %v339_v6, %v45_v38  ;;  %v54_v49 = vmul.f32 %v332_v3, %v31_v34  ;;  %v69_v52 = vadd.f32 %v339_v6, %v46_v44 }
   0xc   :  { %v100_v41 = vpack.c.bf16 %v89_v30, %v88_v29  ;;  %276 = vmatprep.mubr.msk.bf16.mxu0 %vm112_vm0, %v96_v35  ;;  %v101_v51 = vpack.c.bf16 %v91_v43, %v90_v42  ;;  %v47_v53 = vmul.f32 %v332_v3, %v24_v39  ;;  %v48_v54 = vmul.f32 %v332_v3, %v25_v40 }
   0xd   :  { %277 = vmatmul.mubr.msk.bf16.vlgmr.msra.gmra.mrb[0].mxu0 %vm112_vm0, %v97_v46  ;;  %v84_v55 = vmax.f32 %v68_v47, 0.0  ;;  %v76_v56 = vadd.f32 %v339_v6, %v53_v48  ;;  %v77_v57 = vadd.f32 %v339_v6, %v54_v49  ;;  %v55_v58 = vmul.f32 %v332_v3, %v32_v45 }
   0xe   :  { %284 = vmatprep.mubr.msk.bf16.mxu1 %vm112_vm0, %v100_v41  ;;  %v85_v59 = vmax.f32 %v69_v52, 0.0  ;;  %v70_v60 = vadd.f32 %v339_v6, %v47_v53  ;;  %v71_v61 = vadd.f32 %v339_v6, %v48_v54  ;;  %v56_v62 = vmul.f32 %v332_v3, %v33_v50 }
   0xf   :  { %285 = vmatmul.mubr.msk.bf16.vlgmr.msra.gmra.mrb[0].mxu1 %vm112_vm0, %v101_v51  ;;  %v92_v63 = vmax.f32 %v76_v56, 0.0  ;;  %v93_v0 = vmax.f32 %v77_v57, 0.0  ;;  %v78_v1 = vadd.f32 %v339_v6, %v55_v58 }
  0x10   :  { %v98_v2 = vpack.c.bf16 %v85_v59, %v84_v55  ;;  %v86_v4 = vmax.f32 %v70_v60, 0.0  ;;  %v87_v5 = vmax.f32 %v71_v61, 0.0  ;;  %v79_v7 = vadd.f32 %v339_v6, %v56_v62 }
  0x11   :  { %v102_v8 = vpack.c.bf16 %v93_v0, %v92_v63  ;;  %v94_v9 = vmax.f32 %v78_v1, 0.0 }
  0x12   :  { %280 = vmatprep.mubr.msk.bf16.mxu0 %vm112_vm0, %v98_v2  ;;  %v99_v10 = vpack.c.bf16 %v87_v5, %v86_v4  ;;  %v95_v11 = vmax.f32 %v79_v7, 0.0 }
  0x13   :  { %288 = vmatprep.mubr.msk.bf16.mxu1 %vm112_vm0, %v102_v8 }
  0x14   :  { %v103_v12 = vpack.c.bf16 %v95_v11, %v94_v9 }
  0x15   :  { %281 = vmatmul.mubr.msk.bf16.gmra.mrb[4].mxu0 %vm112_vm0, %v99_v10 }
  0x17   :  { %289 = vmatmul.mubr.msk.bf16.gmra.mrb[4].mxu1 %vm112_vm0, %v103_v12 }
  0xe0   :  { %v278_v3 = vpop.f32.mrb[0].mxu0 }
  0xe1   :  { %236 = vst [vmem:[%s473_s4 + $0x10] sm:$0xff] %v278_v3  ;;  %v171_v6 = vpop.f32.mrb[1].mxu0 }
  0xe2   :  { %v286_v13 = vpop.f32.mrb[0].mxu1  ;;  %234 = vst [vmem:[%s473_s4] sm:$0xff] %v171_v6  ;;  %v279_v15 = vpop.f32.mrb[2].mxu0 }
  0xe3   :  { %244 = vst [vmem:[%s473_s4 + $0x50] sm:$0xff] %v286_v13  ;;  %v203_v14 = vpop.f32.mrb[1].mxu1  ;;  %237 = vst [vmem:[%s473_s4 + $0x18] sm:$0xff] %v279_v15  ;;  %v174_v17 = vpop.f32.mrb[3].mxu0 }
  0xe4   :  { %242 = vst [vmem:[%s473_s4 + $0x40] sm:$0xff] %v203_v14  ;;  %v287_v16 = vpop.f32.mrb[2].mxu1  ;;  %235 = vst [vmem:[%s473_s4 + $0x8] sm:$0xff] %v174_v17 }
  0xe5   :  { %245 = vst [vmem:[%s473_s4 + $0x58] sm:$0xff] %v287_v16  ;;  %v206_v18 = vpop.f32.mrb[3].mxu1 }
  0xe6   :  { %243 = vst [vmem:[%s473_s4 + $0x48] sm:$0xff] %v206_v18 }
  0xe8   :  { %v282_v19 = vpop.f32.mrb[4].mxu0 }
  0xe9   :  { %240 = vst [vmem:[%s473_s4 + $0x30] sm:$0xff] %v282_v19  ;;  %v187_v21 = vpop.f32.mrb[5].mxu0 }
  0xea   :  { %v290_v20 = vpop.f32.mrb[4].mxu1  ;;  %238 = vst [vmem:[%s473_s4 + $0x20] sm:$0xff] %v187_v21  ;;  %v283_v23 = vpop.f32.mrb[6].mxu0 }
  0xeb   :  { %248 = vst [vmem:[%s473_s4 + $0x70] sm:$0xff] %v290_v20  ;;  %v219_v22 = vpop.f32.mrb[5].mxu1  ;;  %241 = vst [vmem:[%s473_s4 + $0x38] sm:$0xff] %v283_v23  ;;  %v190_v25 = vpop.f32.mrb[7].mxu0 }
  0xec   :  { %246 = vst [vmem:[%s473_s4 + $0x60] sm:$0xff] %v219_v22  ;;  %v291_v24 = vpop.f32.mrb[6].mxu1  ;;  %239 = vst [vmem:[%s473_s4 + $0x28] sm:$0xff] %v190_v25 }
  0xed   :  { %249 = vst [vmem:[%s473_s4 + $0x78] sm:$0xff] %v291_v24  ;;  %v222_v26 = vpop.f32.mrb[7].mxu1 }
  0xee   :  { %247 = vst [vmem:[%s473_s4 + $0x68] sm:$0xff] %v222_v26 }

// kernel: generator_forward.12
= control target key start
LH: loop header
LB: loop body
LE: loop exit
PB: predicated region body
PF: predicated region fallthrough
CT: control target
= control target key end

     0   :  { %vm12_vm0 = vcmask 58368   ;;  %vm78_vm1 = vcmask 64512   ;;  %v420_v0 = vmov 0.0   ;;  %vm410_vm2 = vcmask 1040384   ;;  %s1294_s0 = inlined_call_operand.vmem [shape: f32[512,8], index: 0, kind: input, shape index: {}]   ;;  %s1295_s1 = inlined_call_operand.vmem [shape: f32[2,8], index: 1, kind: output, shape index: {}]  }
   0x1   :  { %13 = vst.msk [vmem:[%s1295_s1] sm:$0x3] %vm12_vm0, %v420_v0  ;;  %v438_v1 = vld [vmem:[%s1294_s0] sm:$0xff]  ;;  %v443_v2 = vld [vmem:[%s1294_s0 + $0x8] sm:$0xff]  ;;  %v448_v3 = vld [vmem:[%s1294_s0 + $0x10] sm:$0xff] }
   0x2   :  { %v79_v4 = vsel %vm78_vm1, %v438_v1, 0.0  ;;  %v80_v5 = vsel %vm78_vm1, %v443_v2, 0.0  ;;  %v82_v6 = vsel %vm78_vm1, %v448_v3, 0.0  ;;  %v459_v7 = vld [vmem:[%s1294_s0 + $0x18] sm:$0xff]  ;;  %v466_v10 = vld [vmem:[%s1294_s0 + $0x20] sm:$0xff]  ;;  %v473_v13 = vld [vmem:[%s1294_s0 + $0x28] sm:$0xff] }
   0x3   :  { %v81_v8 = vadd.f32 %v80_v5, %v79_v4  ;;  %v84_v9 = vsel %vm78_vm1, %v459_v7, 0.0  ;;  %v86_v12 = vsel %vm78_vm1, %v466_v10, 0.0  ;;  %v88_v15 = vsel %vm78_vm1, %v473_v13, 0.0  ;;  %v480_v16 = vld [vmem:[%s1294_s0 + $0x30] sm:$0xff]  ;;  %v485_v18 = vld [vmem:[%s1294_s0 + $0x38] sm:$0xff]  ;;  %v490_v19 = vld [vmem:[%s1294_s0 + $0x40] sm:$0xff] }
   0x4   :  { %v90_v20 = vsel %vm78_vm1, %v480_v16, 0.0  ;;  %v497_v21 = vld [vmem:[%s1294_s0 + $0x48] sm:$0xff]  ;;  %v502_v22 = vld [vmem:[%s1294_s0 + $0x50] sm:$0xff]  ;;  %v507_v23 = vld [vmem:[%s1294_s0 + $0x58] sm:$0xff]  ;;  %v92_v25 = vsel %vm78_vm1, %v485_v18, 0.0  ;;  %v94_v26 = vsel %vm78_vm1, %v490_v19, 0.0 }
   0x5   :  { %v83_v11 = vadd.f32 %v82_v6, %v81_v8  ;;  %v516_v27 = vld [vmem:[%s1294_s0 + $0x108] sm:$0xff]  ;;  %v521_v28 = vld [vmem:[%s1294_s0 + $0x110] sm:$0xff]  ;;  %v526_v29 = vld [vmem:[%s1294_s0 + $0x118] sm:$0xff]  ;;  %v96_v30 = vsel %vm78_vm1, %v497_v21, 0.0  ;;  %v98_v31 = vsel %vm78_vm1, %v502_v22, 0.0  ;;  %v534_v32 = vsel %vm78_vm1, %v507_v23, 0.0 }
   0x6   :  { %v539_v33 = vld [vmem:[%s1294_s0 + $0x120] sm:$0xff]  ;;  %v544_v34 = vld [vmem:[%s1294_s0 + $0x128] sm:$0xff]  ;;  %v549_v35 = vld [vmem:[%s1294_s0 + $0x130] sm:$0xff]  ;;  %v553_v37 = vsel %vm78_vm1, %v516_v27, 0.0  ;;  %v557_v38 = vsel %vm78_vm1, %v521_v28, 0.0  ;;  %v561_v39 = vsel %vm78_vm1, %v526_v29, 0.0 }
   0x7   :  { %v85_v14 = vadd.f32 %v84_v9, %v83_v11  ;;  %1314 = vst [vmem:[#allocation2_spill] sm:$0xff] %v553_v37  ;;  %1315 = vst [vmem:[#allocation3_spill] sm:$0xff] %v557_v38  ;;  %v566_v40 = vld [vmem:[%s1294_s0 + $0x138] sm:$0xff]  ;;  %v571_v41 = vld [vmem:[%s1294_s0 + $0x140] sm:$0xff]  ;;  %v580_v43 = vsel %vm78_vm1, %v539_v33, 0.0  ;;  %v584_v44 = vsel %vm78_vm1, %v544_v34, 0.0  ;;  %v214_v37 = vmul.f32 %v448_v3, %v448_v3 }
   0x8   :  { %1316 = vst [vmem:[#allocation4_spill] sm:$0xff] %v561_v39  ;;  %v576_v42 = vld [vmem:[%s1294_s0 + $0x148] sm:$0xff]  ;;  %1317 = vst [vmem:[#allocation5_spill] sm:$0xff] %v580_v43  ;;  %v588_v45 = vsel %vm78_vm1, %v549_v35, 0.0  ;;  %v593_v46 = vld [vmem:[%s1294_s0 + $0x150] sm:$0xff]  ;;  %v607_v50 = vsel %vm78_vm1, %v566_v40, 0.0 }
   0x9   :  { %v87_v17 = vadd.f32 %v86_v12, %v85_v14  ;;  %1318 = vst [vmem:[#allocation6_spill] sm:$0xff] %v584_v44  ;;  %1319 = vst [vmem:[#allocation7_spill] sm:$0xff] %v588_v45  ;;  %v598_v47 = vld [vmem:[%s1294_s0 + $0x158] sm:$0xff]  ;;  %v603_v48 = vld [vmem:[%s1294_s0 + $0x160] sm:$0xff]  ;;  %v611_v51 = vsel %vm78_vm1, %v571_v41, 0.0  ;;  %v615_v52 = vsel %vm78_vm1, %v576_v42, 0.0 }
   0xa   :  { %1320 = vst [vmem:[#allocation8_spill] sm:$0xff] %v607_v50  ;;  %1321 = vst [vmem:[#allocation9_spill] sm:$0xff] %v611_v51  ;;  %v620_v53 = vld [vmem:[%s1294_s0 + $0x168] sm:$0xff]  ;;  %v625_v54 = vld [vmem:[%s1294_s0 + $0x170] sm:$0xff]  ;;  %v634_v56 = vsel %vm78_vm1, %v593_v46, 0.0  ;;  %v638_v57 = vsel %vm78_vm1, %v598_v47, 0.0 }
   0xb   :  { %v89_v24 = vadd.f32 %v88_v15, %v87_v17  ;;  %1322 = vst [vmem:[#allocation10_spill] sm:$0xff] %v615_v52  ;;  %v630_v55 = vld [vmem:[%s1294_s0 + $0x178] sm:$0xff]  ;;  %1323 = vst [vmem:[#allocation11_spill] sm:$0xff] %v634_v56  ;;  %v642_v58 = vsel %vm78_vm1, %v603_v48, 0.0  ;;  %v647_v59 = vld [vmem:[%s1294_s0 + $0x180] sm:$0xff]  ;;  %v661_v63 = vsel %vm78_vm1, %v620_v53, 0.0 }
   0xc   :  { %1324 = vst [vmem:[#allocation12_spill] sm:$0xff] %v638_v57  ;;  %1325 = vst [vmem:[#allocation13_spill] sm:$0xff] %v642_v58  ;;  %v652_v60 = vld [vmem:[%s1294_s0 + $0x188] sm:$0xff]  ;;  %v657_v61 = vld [vmem:[%s1294_s0 + $0x190] sm:$0xff]  ;;  %v665_v0 = vsel %vm78_vm1, %v625_v54, 0.0  ;;  %v669_v4 = vsel %vm78_vm1, %v630_v55, 0.0 }
   0xd   :  { %v91_v36 = vadd.f32 %v90_v20, %v89_v24  ;;  %1326 = vst [vmem:[#allocation14_spill] sm:$0xff] %v661_v63  ;;  %1327 = vst [vmem:[#allocation15_spill] sm:$0xff] %v665_v0  ;;  %v674_v5 = vld [vmem:[%s1294_s0 + $0x198] sm:$0xff]  ;;  %v679_v6 = vld [vmem:[%s1294_s0 + $0x1a0] sm:$0xff]  ;;  %v688_v9 = vsel %vm78_vm1, %v647_v59, 0.0  ;;  %v692_v11 = vsel %vm78_vm1, %v652_v60, 0.0 }
   0xe   :  { %1328 = vst [vmem:[#allocation16_spill] sm:$0xff] %v669_v4  ;;  %v684_v8 = vld [vmem:[%s1294_s0 + $0x1a8] sm:$0xff]  ;;  %1329 = vst [vmem:[#allocation17_spill] sm:$0xff] %v688_v9  ;;  %v696_v12 = vsel %vm78_vm1, %v657_v61, 0.0  ;;  %v701_v14 = vld [vmem:[%s1294_s0 + $0x60] sm:$0xff] }
   0xf   :  { %v93_v49 = vadd.f32 %v92_v25, %v91_v36  ;;  %1330 = vst [vmem:[#allocation18_spill] sm:$0xff] %v692_v11  ;;  %1331 = vst [vmem:[#allocation19_spill] sm:$0xff] %v696_v12  ;;  %v706_v15 = vld [vmem:[%s1294_s0 + $0x1b0] sm:$0xff]  ;;  %v711_v17 = vld [vmem:[%s1294_s0 + $0x1b8] sm:$0xff]  ;;  %v720_v25 = vsel %vm78_vm1, %v674_v5, 0.0  ;;  %v728_v36 = vsel %vm78_vm1, %v684_v8, 0.0 }
  0x10   :  { %v716_v20 = vld [vmem:[%s1294_s0 + $0x1c0] sm:$0xff]  ;;  %1332 = vst [vmem:[#allocation20_spill] sm:$0xff] %v720_v25  ;;  %1334 = vst [vmem:[#allocation22_spill] sm:$0xff] %v728_v36  ;;  %v751_v36 = vsel %vm78_vm1, %v711_v17, 0.0  ;;  %v765_v11 = vld [vmem:[%s1294_s0 + $0x1e8] sm:$0xff] }
  0x11   :  { %v95_v62 = vadd.f32 %v94_v26, %v93_v49  ;;  %v724_v26 = vsel %vm78_vm1, %v679_v6, 0.0  ;;  %v733_v49 = vld [vmem:[%s1294_s0 + $0x1c8] sm:$0xff]  ;;  %1336 = vst [vmem:[#allocation24_spill] sm:$0xff] %v751_v36  ;;  %v755_v25 = vsel %vm78_vm1, %v716_v20, 0.0  ;;  %v760_v12 = vld [vmem:[%s1294_s0 + $0x1e0] sm:$0xff]  ;;  %v787_v0 = vld [vmem:[%s1294_s0 + $0x1f8] sm:$0xff] }
  0x12   :  { %1333 = vst [vmem:[#allocation21_spill] sm:$0xff] %v724_v26  ;;  %v747_v26 = vsel %vm78_vm1, %v706_v15, 0.0  ;;  %1337 = vst [vmem:[#allocation25_spill] sm:$0xff] %v755_v25  ;;  %v774_v9 = vsel %vm78_vm1, %v733_v49, 0.0  ;;  %v809_v58 = vsel %vm78_vm1, %v787_v0, 0.0  ;;  %v838_v56 = vld [vmem:[%s1294_s0 + $0x90] sm:$0xff] }
  0x13   :  { %v97_v24 = vadd.f32 %v96_v30, %v95_v62  ;;  %v738_v30 = vld [vmem:[%s1294_s0 + $0x1d0] sm:$0xff]  ;;  %v743_v62 = vld [vmem:[%s1294_s0 + $0x1d8] sm:$0xff]  ;;  %1335 = vst [vmem:[#allocation23_spill] sm:$0xff] %v747_v26  ;;  %1339 = vst [vmem:[#allocation27_spill] sm:$0xff] %v774_v9  ;;  %v797_v9 = vsel %vm78_vm1, %v765_v11, 0.0 }
  0x14   :  { %v770_v26 = vld [vmem:[%s1294_s0 + $0x1f0] sm:$0xff]  ;;  %v778_v25 = vsel %vm78_vm1, %v738_v30, 0.0  ;;  %v782_v4 = vsel %vm78_vm1, %v743_v62, 0.0  ;;  %1342 = vst [vmem:[#allocation30_spill] sm:$0xff] %v787_v0  ;;  %1344 = vst [vmem:[#allocation32_spill] sm:$0xff] %v797_v9  ;;  %v843_v52 = vld [vmem:[%s1294_s0 + $0x98] sm:$0xff] }
  0x15   :  { %1338 = vst [vmem:[#allocation26_spill] sm:$0xff] %v770_v26  ;;  %v99_v36 = vadd.f32 %v98_v31, %v97_v24  ;;  %1340 = vst [vmem:[#allocation28_spill] sm:$0xff] %v778_v25  ;;  %v102_v31 = vsel %vm78_vm1, %v701_v14, 0.0  ;;  %v793_v24 = vsel %vm78_vm1, %v760_v12, 0.0  ;;  %v801_v25 = vsel %vm78_vm1, %v770_v26, 0.0  ;;  %v28_v9 = vld [vmem:[%s1294_s0 + $0x70] sm:$0xff] }
  0x16   :  { %1341 = vst [vmem:[#allocation29_spill] sm:$0xff] %v782_v4  ;;  %1343 = vst [vmem:[#allocation31_spill] sm:$0xff] %v793_v24  ;;  %v27_v4 = vld [vmem:[%s1294_s0 + $0x68] sm:$0xff]  ;;  %v848_v51 = vld [vmem:[%s1294_s0 + $0xa0] sm:$0xff]  ;;  %v116_v39 = vsel %vm78_vm1, %v843_v52, 0.0 }
  0x17   :  { %1345 = vst [vmem:[#allocation33_spill] sm:$0xff] %v801_v25  ;;  %v101_v63 = vadd.f32 %v534_v32, %v99_v36  ;;  %1346 = vst [vmem:[#allocation34_spill] sm:$0xff] %v809_v58  ;;  %v104_v24 = vsel %vm78_vm1, %v27_v4, 0.0  ;;  %v818_v25 = vld [vmem:[%s1294_s0 + $0x78] sm:$0xff]  ;;  %v823_v32 = vld [vmem:[%s1294_s0 + $0x80] sm:$0xff]  ;;  %v106_v58 = vsel %vm78_vm1, %v28_v9, 0.0 }
  0x18   :  { %1347 = vst [vmem:[#allocation35_spill] sm:$0xff] %v818_v25  ;;  %1348 = vst [vmem:[#allocation36_spill] sm:$0xff] %v823_v32  ;;  %v828_v36 = vld [vmem:[%s1294_s0 + $0x88] sm:$0xff]  ;;  %v864_v43 = vld [vmem:[%s1294_s0 + $0xb0] sm:$0xff]  ;;  %v118_v38 = vsel %vm78_vm1, %v848_v51, 0.0 }
  0x19   :  { %v103_v57 = vadd.f32 %v102_v31, %v101_v63  ;;  %1349 = vst [vmem:[#allocation37_spill] sm:$0xff] %v828_v36  ;;  %v212_v63 = vmul.f32 %v438_v1, %v438_v1  ;;  %v213_v31 = vmul.f32 %v443_v2, %v443_v2  ;;  %1350 = vst [vmem:[#allocation38_spill] sm:$0xff] %v838_v56  ;;  %v108_v1 = vsel %vm78_vm1, %v818_v25, 0.0  ;;  %v859_v44 = vld [vmem:[%s1294_s0 + $0xa8] sm:$0xff]  ;;  %v905_v0 = vld [vmem:[%s1294_s0 + $0xd8] sm:$0xff] }
  0x1a   :  { %1351 = vst [vmem:[#allocation39_spill] sm:$0xff] %v843_v52  ;;  %1352 = vst [vmem:[#allocation40_spill] sm:$0xff] %v848_v51  ;;  %v110_v2 = vsel %vm78_vm1, %v823_v32, 0.0  ;;  %v112_v45 = vsel %vm78_vm1, %v828_v36, 0.0  ;;  %v882_v36 = vld [vmem:[%s1294_s0 + $0xc0] sm:$0xff]  ;;  %v887_v32 = vld [vmem:[%s1294_s0 + $0xc8] sm:$0xff]  ;;  %v215_v25 = vmul.f32 %v459_v7, %v459_v7 }
  0x1b   :  { %v105_v50 = vadd.f32 %v104_v24, %v103_v57  ;;  %1353 = vst [vmem:[#allocation41_spill] sm:$0xff] %v859_v44  ;;  %1354 = vst [vmem:[#allocation42_spill] sm:$0xff] %v864_v43  ;;  %v869_v57 = vld [vmem:[%s1294_s0 + $0xb8] sm:$0xff]  ;;  %v114_v24 = vsel %vm78_vm1, %v838_v56, 0.0  ;;  %v892_v52 = vld [vmem:[%s1294_s0 + $0xd0] sm:$0xff]  ;;  %v120_v51 = vsel %vm78_vm1, %v859_v44, 0.0 }
  0x1c   :  { %1355 = vst [vmem:[#allocation43_spill] sm:$0xff] %v869_v57  ;;  %1356 = vst [vmem:[#allocation44_spill] sm:$0xff] %v882_v36  ;;  %v898_v3 = vsel %vm78_vm1, %v864_v43, 0.0  ;;  %v910_v26 = vld [vmem:[%s1294_s0 + $0xe0] sm:$0xff]  ;;  %v922_v7 = vsel %vm78_vm1, %v887_v32, 0.0  ;;  %v926_v43 = vsel %vm78_vm1, %v892_v52, 0.0 }
  0x1d   :  { %1357 = vst [vmem:[#allocation45_spill] sm:$0xff] %v887_v32  ;;  %1358 = vst [vmem:[#allocation46_spill] sm:$0xff] %v892_v52  ;;  %v107_v56 = vadd.f32 %v106_v58, %v105_v50  ;;  %v914_v50 = vsel %vm78_vm1, %v869_v57, 0.0  ;;  %v918_v58 = vsel %vm78_vm1, %v882_v36, 0.0  ;;  %v931_v44 = vld [vmem:[%s1294_s0 + $0xe8] sm:$0xff]  ;;  %v936_v57 = vld [vmem:[%s1294_s0 + $0xf0] sm:$0xff]  ;;  %v216_v52 = vmul.f32 %v466_v10, %v466_v10 }
  0x1e   :  { %1359 = vst [vmem:[#allocation47_spill] sm:$0xff] %v905_v0  ;;  %1360 = vst [vmem:[#allocation48_spill] sm:$0xff] %v910_v26  ;;  %v944_v32 = vsel %vm78_vm1, %v910_v26, 0.0  ;;  %v219_v26 = vmul.f32 %v485_v18, %v485_v18  ;;  %v220_v10 = vmul.f32 %v490_v19, %v490_v19  ;;  %v245_v18 = vmul.f32 %v516_v27, %v516_v27 }
  0x1f   :  { %1361 = vst [vmem:[#allocation49_spill] sm:$0xff] %v918_v58  ;;  %1362 = vst [vmem:[#allocation50_spill] sm:$0xff] %v922_v7  ;;  %v109_v36 = vadd.f32 %v108_v1, %v107_v56  ;;  %v940_v58 = vsel %vm78_vm1, %v905_v0, 0.0  ;;  %v954_v7 = vsel %vm78_vm1, %v936_v57, 0.0  ;;  %v217_v56 = vmul.f32 %v473_v13, %v473_v13 }
  0x20   :  { %1363 = vst [vmem:[#allocation51_spill] sm:$0xff] %v926_v43  ;;  %1364 = vst [vmem:[#allocation52_spill] sm:$0xff] %v931_v44  ;;  %v950_v43 = vsel %vm78_vm1, %v931_v44, 0.0  ;;  %v218_v1 = vmul.f32 %v480_v16, %v480_v16  ;;  %v221_v44 = vmul.f32 %v497_v21, %v497_v21  ;;  %v224_v13 = vmul.f32 %v701_v14, %v701_v14 }
  0x21   :  { %1365 = vst [vmem:[#allocation53_spill] sm:$0xff] %v936_v57  ;;  %1366 = vst [vmem:[#allocation54_spill] sm:$0xff] %v954_v7  ;;  %v111_v0 = vadd.f32 %v110_v2, %v109_v36  ;;  %v222_v57 = vmul.f32 %v502_v22, %v502_v22  ;;  %v223_v7 = vmul.f32 %v507_v23, %v507_v23 }
  0x22   :  { %v972_v16 = vmul.f32 %v27_v4, %v27_v4  ;;  %v974_v2 = vmul.f32 %v28_v9, %v28_v9  ;;  %v246_v19 = vmul.f32 %v521_v28, %v521_v28  ;;  %v247_v21 = vmul.f32 %v526_v29, %v526_v29 }
  0x23   :  { %v113_v36 = vadd.f32 %v112_v45, %v111_v0  ;;  %v248_v22 = vmul.f32 %v539_v33, %v539_v33  ;;  %v249_v23 = vmul.f32 %v544_v34, %v544_v34  ;;  %v250_v45 = vmul.f32 %v549_v35, %v549_v35 }
  0x24   :  { %v251_v4 = vmul.f32 %v566_v40, %v566_v40  ;;  %v252_v27 = vmul.f32 %v571_v41, %v571_v41  ;;  %v253_v28 = vmul.f32 %v576_v42, %v576_v42  ;;  %v254_v29 = vmul.f32 %v593_v46, %v593_v46 }
  0x25   :  { %v115_v0 = vadd.f32 %v114_v24, %v113_v36  ;;  %v255_v33 = vmul.f32 %v598_v47, %v598_v47  ;;  %v276_v34 = vsel %vm78_vm1, %v212_v63, 0.0  ;;  %v277_v35 = vsel %vm78_vm1, %v213_v31, 0.0 }
  0x26   :  { %v256_v40 = vmul.f32 %v603_v48, %v603_v48  ;;  %v278_v14 = vadd.f32 %v277_v35, %v276_v34  ;;  %v279_v41 = vsel %vm78_vm1, %v214_v37, 0.0  ;;  %v257_v42 = vmul.f32 %v620_v53, %v620_v53  ;;  %v1368_v34 = vld [vmem:[#allocation30_spill] sm:$0xff] }
  0x27   :  { %v117_v9 = vadd.f32 %v116_v39, %v115_v0  ;;  %v258_v46 = vmul.f32 %v625_v54, %v625_v54  ;;  %v259_v47 = vmul.f32 %v630_v55, %v630_v55  ;;  %v281_v63 = vsel %vm78_vm1, %v215_v25, 0.0  ;;  %v1367_v0 = vld [vmem:[#allocation26_spill] sm:$0xff] }
  0x28   :  { %v260_v39 = vmul.f32 %v647_v59, %v647_v59  ;;  %v261_v48 = vmul.f32 %v652_v60, %v652_v60  ;;  %v280_v31 = vadd.f32 %v279_v41, %v278_v14  ;;  %v262_v37 = vmul.f32 %v657_v61, %v657_v61  ;;  %v1369_v41 = vld [vmem:[#allocation49_spill] sm:$0xff] }
  0x29   :  { %v119_v24 = vadd.f32 %v118_v38, %v117_v9  ;;  %v263_v53 = vmul.f32 %v674_v5, %v674_v5  ;;  %v264_v54 = vmul.f32 %v679_v6, %v679_v6  ;;  %v283_v55 = vsel %vm78_vm1, %v216_v52, 0.0 }
  0x2a   :  { %v265_v38 = vmul.f32 %v684_v8, %v684_v8  ;;  %v266_v59 = vmul.f32 %v706_v15, %v706_v15  ;;  %v282_v60 = vadd.f32 %v281_v63, %v280_v31  ;;  %v267_v36 = vmul.f32 %v711_v17, %v711_v17 }
  0x2b   :  { %v121_v25 = vadd.f32 %v120_v51, %v119_v24  ;;  %v268_v61 = vmul.f32 %v716_v20, %v716_v20  ;;  %v269_v5 = vmul.f32 %v733_v49, %v733_v49  ;;  %v285_v6 = vsel %vm78_vm1, %v217_v56, 0.0 }
  0x2c   :  { %v270_v52 = vmul.f32 %v738_v30, %v738_v30  ;;  %v271_v8 = vmul.f32 %v743_v62, %v743_v62  ;;  %v284_v15 = vadd.f32 %v283_v55, %v282_v60  ;;  %v272_v17 = vmul.f32 %v760_v12, %v760_v12 }
  0x2d   :  { %v123_v51 = vadd.f32 %v898_v3, %v121_v25  ;;  %v273_v20 = vmul.f32 %v765_v11, %v765_v11  ;;  %v274_v49 = vmul.f32 %v1367_v0, %v1367_v0  ;;  %v287_v56 = vsel %vm78_vm1, %v218_v1, 0.0  ;;  %v1371_v25 = vld [vmem:[#allocation51_spill] sm:$0xff] }
  0x2e   :  { %v275_v30 = vmul.f32 %v1368_v34, %v1368_v34  ;;  %v286_v35 = vadd.f32 %v285_v6, %v284_v15  ;;  %v289_v62 = vsel %vm78_vm1, %v219_v26, 0.0  ;;  %v291_v9 = vsel %vm78_vm1, %v220_v10, 0.0  ;;  %v1373_v34 = vld [vmem:[#allocation54_spill] sm:$0xff] }
  0x2f   :  { %v125_v3 = vadd.f32 %v914_v50, %v123_v51  ;;  %v293_v12 = vsel %vm78_vm1, %v221_v44, 0.0  ;;  %v295_v14 = vsel %vm78_vm1, %v222_v57, 0.0  ;;  %v297_v11 = vsel %vm78_vm1, %v223_v7, 0.0  ;;  %v1370_v7 = vld [vmem:[#allocation50_spill] sm:$0xff] }
  0x30   :  { %v288_v24 = vadd.f32 %v287_v56, %v286_v35  ;;  %v299_v1 = vsel %vm78_vm1, %v224_v13, 0.0  ;;  %v1055_v50 = vsel %vm78_vm1, %v245_v18, 0.0  ;;  %v1058_v31 = vsel %vm78_vm1, %v246_v19, 0.0  ;;  %v1372_v56 = vld [vmem:[#allocation35_spill] sm:$0xff] }
  0x31   :  { %v127_v63 = vadd.f32 %v1369_v41, %v125_v3  ;;  %v1061_v26 = vsel %vm78_vm1, %v247_v21, 0.0  ;;  %v1064_v44 = vsel %vm78_vm1, %v248_v22, 0.0  ;;  %v1067_v57 = vsel %vm78_vm1, %v249_v23, 0.0 }
  0x32   :  { %v290_v55 = vadd.f32 %v289_v62, %v288_v24  ;;  %v1071_v13 = vsel %vm78_vm1, %v250_v45, 0.0  ;;  %v1074_v18 = vsel %vm78_vm1, %v251_v4, 0.0  ;;  %v1077_v19 = vsel %vm78_vm1, %v252_v27, 0.0  ;;  %v1374_v62 = vld [vmem:[#allocation36_spill] sm:$0xff] }
  0x33   :  { %v129_v10 = vadd.f32 %v1370_v7, %v127_v63  ;;  %v1080_v21 = vsel %vm78_vm1, %v253_v28, 0.0  ;;  %v1083_v22 = vsel %vm78_vm1, %v254_v29, 0.0  ;;  %v1086_v23 = vsel %vm78_vm1, %v255_v33, 0.0 }
  0x34   :  { %v292_v6 = vadd.f32 %v291_v9, %v290_v55  ;;  %v1090_v45 = vsel %vm78_vm1, %v256_v40, 0.0  ;;  %v1093_v4 = vsel %vm78_vm1, %v257_v42, 0.0  ;;  %v1096_v27 = vsel %vm78_vm1, %v258_v46, 0.0 }
  0x35   :  { %v131_v60 = vadd.f32 %v1371_v25, %v129_v10  ;;  %v1099_v28 = vsel %vm78_vm1, %v259_v47, 0.0  ;;  %v1102_v29 = vsel %vm78_vm1, %v260_v39, 0.0  ;;  %v1105_v33 = vsel %vm78_vm1, %v261_v48, 0.0  ;;  %v1376_v10 = vld [vmem:[#allocation38_spill] sm:$0xff] }
  0x36   :  { %v294_v15 = vadd.f32 %v293_v12, %v292_v6  ;;  %v1109_v40 = vsel %vm78_vm1, %v262_v37, 0.0  ;;  %v1112_v42 = vsel %vm78_vm1, %v263_v53, 0.0  ;;  %v1115_v46 = vsel %vm78_vm1, %v264_v54, 0.0  ;;  %v1377_v25 = vld [vmem:[#allocation2_spill] sm:$0xff] }
  0x37   :  { %v133_v51 = vadd.f32 %v940_v58, %v131_v60  ;;  %v1118_v47 = vsel %vm78_vm1, %v265_v38, 0.0  ;;  %v1121_v39 = vsel %vm78_vm1, %v266_v59, 0.0  ;;  %v1124_v48 = vsel %vm78_vm1, %v267_v36, 0.0 }
  0x38   :  { %v296_v0 = vadd.f32 %v295_v14, %v294_v15  ;;  %v1128_v37 = vsel %vm78_vm1, %v268_v61, 0.0  ;;  %v1131_v53 = vsel %vm78_vm1, %v269_v5, 0.0  ;;  %v1134_v54 = vsel %vm78_vm1, %v270_v52, 0.0 }
  0x39   :  { %v135_v58 = vadd.f32 %v944_v32, %v133_v51  ;;  %v1137_v38 = vsel %vm78_vm1, %v271_v8, 0.0  ;;  %v1140_v59 = vsel %vm78_vm1, %v272_v17, 0.0  ;;  %v1143_v36 = vsel %vm78_vm1, %v273_v20, 0.0  ;;  %v1148_v32 = vld [vmem:[%s1294_s0 + $0xf8] sm:$0xff]  ;;  %v1378_v51 = vld [vmem:[#allocation39_spill] sm:$0xff] }
  0x3a   :  { %v298_v5 = vadd.f32 %v297_v11, %v296_v0  ;;  %v1152_v52 = vsel %vm78_vm1, %v274_v49, 0.0  ;;  %v1155_v8 = vsel %vm78_vm1, %v275_v30, 0.0  ;;  %v140_v17 = vsel %vm78_vm1, %v1148_v32, 0.0 }
  0x3b   :  { %v137_v61 = vadd.f32 %v950_v43, %v135_v58  ;;  %v227_v20 = vmul.f32 %v1372_v56, %v1372_v56  ;;  %v301_v3 = vsel %vm78_vm1, %v972_v16, 0.0  ;;  %v1166_v43 = vld [vmem:[%s1294_s0 + $0x100] sm:$0xff]  ;;  %v228_v9 = vmul.f32 %v1374_v62, %v1374_v62  ;;  %v1375_v16 = vld [vmem:[#allocation37_spill] sm:$0xff]  ;;  %v1379_v58 = vld [vmem:[#allocation3_spill] sm:$0xff] }
  0x3c   :  { %v300_v35 = vadd.f32 %v299_v1, %v298_v5  ;;  %v142_v30 = vsel %vm78_vm1, %v1166_v43, 0.0  ;;  %v303_v12 = vsel %vm78_vm1, %v974_v2, 0.0  ;;  %v229_v41 = vmul.f32 %v1375_v16, %v1375_v16  ;;  %v1380_v5 = vld [vmem:[#allocation40_spill] sm:$0xff]  ;;  %v1383_v62 = vld [vmem:[#allocation5_spill] sm:$0xff] }
  0x3d   :  { %v139_v49 = vadd.f32 %v1373_v34, %v137_v61  ;;  %v305_v63 = vsel %vm78_vm1, %v227_v20, 0.0  ;;  %v230_v1 = vmul.f32 %v1376_v10, %v1376_v10  ;;  %v307_v55 = vsel %vm78_vm1, %v228_v9, 0.0  ;;  %v1381_v20 = vld [vmem:[#allocation4_spill] sm:$0xff] }
  0x3e   :  { %v302_v11 = vadd.f32 %v301_v3, %v300_v35  ;;  %v231_v2 = vmul.f32 %v1378_v51, %v1378_v51  ;;  %v309_v15 = vsel %vm78_vm1, %v229_v41, 0.0  ;;  %v1385_v41 = vld [vmem:[#allocation6_spill] sm:$0xff] }
  0x3f   :  { %v141_v14 = vadd.f32 %v140_v17, %v139_v49  ;;  %v232_v17 = vmul.f32 %v1380_v5, %v1380_v5  ;;  %v311_v56 = vsel %vm78_vm1, %v230_v1, 0.0  ;;  %v1382_v49 = vld [vmem:[#allocation41_spill] sm:$0xff] }
  0x40   :  { %v304_v7 = vadd.f32 %v303_v12, %v302_v11  ;;  %v233_v35 = vmul.f32 %v1382_v49, %v1382_v49 }
  0x41   :  { %v143_v24 = vadd.f32 %v142_v30, %v141_v14  ;;  %v313_v30 = vsel %vm78_vm1, %v231_v2, 0.0  ;;  %v1384_v14 = vld [vmem:[#allocation42_spill] sm:$0xff]  ;;  %v315_v16 = vsel %vm78_vm1, %v232_v17, 0.0 }
  0x42   :  { %v306_v6 = vadd.f32 %v305_v63, %v304_v7  ;;  %v234_v11 = vmul.f32 %v1384_v14, %v1384_v14  ;;  %v1386_v7 = vld [vmem:[#allocation43_spill] sm:$0xff]  ;;  %v317_v1 = vsel %vm78_vm1, %v233_v35, 0.0 }
  0x43   :  { %v145_v60 = vadd.f32 %v1377_v25, %v143_v24  ;;  %v235_v10 = vmul.f32 %v1386_v7, %v1386_v7 }
  0x44   :  { %v308_v61 = vadd.f32 %v307_v55, %v306_v6  ;;  %v1387_v55 = vld [vmem:[#allocation7_spill] sm:$0xff]  ;;  %v1388_v6 = vld [vmem:[#allocation44_spill] sm:$0xff]  ;;  %v319_v2 = vsel %vm78_vm1, %v234_v11, 0.0 }
  0x45   :  { %v147_v0 = vadd.f32 %v1379_v58, %v145_v60  ;;  %v236_v51 = vmul.f32 %v1388_v6, %v1388_v6  ;;  %v321_v17 = vsel %vm78_vm1, %v235_v10, 0.0 }
  0x46   :  { %v310_v34 = vadd.f32 %v309_v15, %v308_v61  ;;  %v1389_v15 = vld [vmem:[#allocation8_spill] sm:$0xff]  ;;  %v1390_v61 = vld [vmem:[#allocation45_spill] sm:$0xff] }
  0x47   :  { %v149_v3 = vadd.f32 %v1381_v20, %v147_v0  ;;  %v237_v5 = vmul.f32 %v1390_v61, %v1390_v61  ;;  %v323_v35 = vsel %vm78_vm1, %v236_v51, 0.0 }
  0x48   :  { %v312_v12 = vadd.f32 %v311_v56, %v310_v34  ;;  %v1391_v56 = vld [vmem:[#allocation9_spill] sm:$0xff]  ;;  %v1392_v34 = vld [vmem:[#allocation46_spill] sm:$0xff] }
  0x49   :  { %v151_v9 = vadd.f32 %v1383_v62, %v149_v3  ;;  %v238_v49 = vmul.f32 %v1392_v34, %v1392_v34  ;;  %v325_v11 = vsel %vm78_vm1, %v237_v5, 0.0 }
  0x4a   :  { %v314_v24 = vadd.f32 %v313_v30, %v312_v12  ;;  %v1393_v30 = vld [vmem:[#allocation10_spill] sm:$0xff]  ;;  %v1394_v12 = vld [vmem:[#allocation47_spill] sm:$0xff] }
  0x4b   :  { %v153_v63 = vadd.f32 %v1385_v41, %v151_v9  ;;  %v239_v14 = vmul.f32 %v1394_v12, %v1394_v12  ;;  %v327_v10 = vsel %vm78_vm1, %v238_v49, 0.0  ;;  %v1402_v49 = vld [vmem:[#allocation15_spill] sm:$0xff]  ;;  %v1403_v12 = vld [vmem:[#allocation16_spill] sm:$0xff] }
  0x4c   :  { %v316_v60 = vadd.f32 %v315_v16, %v314_v24  ;;  %v1395_v16 = vld [vmem:[#allocation11_spill] sm:$0xff]  ;;  %v1396_v24 = vld [vmem:[#allocation48_spill] sm:$0xff] }
  0x4d   :  { %v155_v25 = vadd.f32 %v1387_v55, %v153_v63  ;;  %v240_v7 = vmul.f32 %v1396_v24, %v1396_v24  ;;  %v329_v51 = vsel %vm78_vm1, %v239_v14, 0.0 }
  0x4e   :  { %v318_v0 = vadd.f32 %v317_v1, %v316_v60  ;;  %v1397_v1 = vld [vmem:[#allocation12_spill] sm:$0xff] }
  0x4f   :  { %v157_v58 = vadd.f32 %v1389_v15, %v155_v25  ;;  %v1398_v60 = vld [vmem:[#allocation52_spill] sm:$0xff]  ;;  %v331_v5 = vsel %vm78_vm1, %v240_v7, 0.0  ;;  %v1405_v7 = vld [vmem:[#allocation18_spill] sm:$0xff] }
  0x50   :  { %v320_v3 = vadd.f32 %v319_v2, %v318_v0  ;;  %v241_v6 = vmul.f32 %v1398_v60, %v1398_v60  ;;  %v1399_v2 = vld [vmem:[#allocation13_spill] sm:$0xff] }
  0x51   :  { %v159_v20 = vadd.f32 %v1391_v56, %v157_v58  ;;  %v1400_v0 = vld [vmem:[#allocation53_spill] sm:$0xff] }
  0x52   :  { %v322_v9 = vadd.f32 %v321_v17, %v320_v3  ;;  %v242_v61 = vmul.f32 %v1400_v0, %v1400_v0  ;;  %v1401_v17 = vld [vmem:[#allocation14_spill] sm:$0xff]  ;;  %v243_v3 = vmul.f32 %v1148_v32, %v1148_v32  ;;  %v333_v34 = vsel %vm78_vm1, %v241_v6, 0.0  ;;  %v1407_v6 = vld [vmem:[#allocation20_spill] sm:$0xff] }
  0x53   :  { %v161_v62 = vadd.f32 %v1393_v30, %v159_v20  ;;  %v1409_v0 = vld [vmem:[#allocation22_spill] sm:$0xff] }
  0x54   :  { %v324_v63 = vadd.f32 %v323_v35, %v322_v9  ;;  %v335_v9 = vsel %vm78_vm1, %v242_v61, 0.0 }
  0x55   :  { %v163_v41 = vadd.f32 %v1395_v16, %v161_v62  ;;  %v244_v62 = vmul.f32 %v1166_v43, %v1166_v43  ;;  %v337_v16 = vsel %vm78_vm1, %v243_v3, 0.0  ;;  %v1411_v3 = vld [vmem:[#allocation24_spill] sm:$0xff] }
  0x56   :  { %v326_v25 = vadd.f32 %v325_v11, %v324_v63 }
  0x57   :  { %v165_v55 = vadd.f32 %v1397_v1, %v163_v41  ;;  %v1404_v41 = vld [vmem:[#allocation17_spill] sm:$0xff]  ;;  %v339_v32 = vsel %vm78_vm1, %v244_v62, 0.0  ;;  %v1413_v62 = vld [vmem:[#allocation27_spill] sm:$0xff] }
  0x58   :  { %v328_v58 = vadd.f32 %v327_v10, %v326_v25 }
  0x59   :  { %v167_v15 = vadd.f32 %v1399_v2, %v165_v55  ;;  %v1406_v55 = vld [vmem:[#allocation19_spill] sm:$0xff]  ;;  %v1408_v2 = vld [vmem:[#allocation21_spill] sm:$0xff] }
  0x5a   :  { %v330_v20 = vadd.f32 %v329_v51, %v328_v58 }
  0x5b   :  { %v169_v56 = vadd.f32 %v1401_v17, %v167_v15  ;;  %v1410_v17 = vld [vmem:[#allocation23_spill] sm:$0xff] }
  0x5c   :  { %v332_v30 = vadd.f32 %v331_v5, %v330_v20 }
  0x5d   :  { %v171_v35 = vadd.f32 %v1402_v49, %v169_v56 }
  0x5e   :  { %v334_v11 = vadd.f32 %v333_v34, %v332_v30 }
  0x5f   :  { %v173_v14 = vadd.f32 %v1403_v12, %v171_v35  ;;  %v1412_v35 = vld [vmem:[#allocation25_spill] sm:$0xff]  ;;  %v1414_v12 = vld [vmem:[#allocation28_spill] sm:$0xff] }
  0x60   :  { %v336_v24 = vadd.f32 %v335_v9, %v334_v11  ;;  %v1415_v11 = vld [vmem:[#allocation29_spill] sm:$0xff] }
  0x61   :  { %v175_v63 = vadd.f32 %v1404_v41, %v173_v14  ;;  %v1416_v41 = vld [vmem:[#allocation31_spill] sm:$0xff] }
  0x62   :  { %v338_v1 = vadd.f32 %v337_v16, %v336_v24  ;;  %v1417_v24 = vld [vmem:[#allocation32_spill] sm:$0xff] }
  0x63   :  { %v177_v10 = vadd.f32 %v1405_v7, %v175_v63  ;;  %v1418_v7 = vld [vmem:[#allocation33_spill] sm:$0xff] }
  0x64   :  { %v340_v60 = vadd.f32 %v339_v32, %v338_v1  ;;  %v1419_v1 = vld [vmem:[#allocation34_spill] sm:$0xff] }
  0x65   :  { %v179_v25 = vadd.f32 %v1406_v55, %v177_v10 }
  0x66   :  { %v342_v51 = vadd.f32 %v1055_v50, %v340_v60 }
  0x67   :  { %v181_v43 = vadd.f32 %v1407_v6, %v179_v25 }
  0x68   :  { %v344_v58 = vadd.f32 %v1058_v31, %v342_v51 }
  0x69   :  { %v183_v15 = vadd.f32 %v1408_v2, %v181_v43 }
  0x6a   :  { %v346_v5 = vadd.f32 %v1061_v26, %v344_v58 }
  0x6b   :  { %v185_v61 = vadd.f32 %v1409_v0, %v183_v15 }
  0x6c   :  { %v348_v20 = vadd.f32 %v1064_v44, %v346_v5 }
  0x6d   :  { %v187_v56 = vadd.f32 %v1410_v17, %v185_v61 }
  0x6e   :  { %v350_v49 = vadd.f32 %v1067_v57, %v348_v20 }
  0x6f   :  { %v189_v34 = vadd.f32 %v1411_v3, %v187_v56 }
  0x70   :  { %v352_v50 = vadd.f32 %v1071_v13, %v350_v49 }
  0x71   :  { %v191_v30 = vadd.f32 %v1412_v35, %v189_v34 }
  0x72   :  { %v354_v31 = vadd.f32 %v1074_v18, %v352_v50 }
  0x73   :  { %v193_v9 = vadd.f32 %v1413_v62, %v191_v30 }
  0x74   :  { %v356_v26 = vadd.f32 %v1077_v19, %v354_v31 }
  0x75   :  { %v195_v14 = vadd.f32 %v1414_v12, %v193_v9 }
  0x76   :  { %v358_v44 = vadd.f32 %v1080_v21, %v356_v26 }
  0x77   :  { %v197_v16 = vadd.f32 %v1415_v11, %v195_v14 }
  0x78   :  { %v360_v57 = vadd.f32 %v1083_v22, %v358_v44 }
  0x79   :  { %v199_v63 = vadd.f32 %v1416_v41, %v197_v16 }
  0x7a   :  { %v362_v13 = vadd.f32 %v1086_v23, %v360_v57 }
  0x7b   :  { %v201_v32 = vadd.f32 %v1417_v24, %v199_v63 }
  0x7c   :  { %v364_v18 = vadd.f32 %v1090_v45, %v362_v13 }
  0x7d   :  { %v203_v10 = vadd.f32 %v1418_v7, %v201_v32 }
  0x7e   :  { %v366_v19 = vadd.f32 %v1093_v4, %v364_v18 }
  0x7f   :  { %v205_v55 = vadd.f32 %v1419_v1, %v203_v10 }
  0x80   :  { %v368_v25 = vadd.f32 %v1096_v27, %v366_v19 }
  0x81   :  { %v206_v2 = vrot.slane %v205_v55, 4 }
  0x82   :  { %v370_v21 = vadd.f32 %v1099_v28, %v368_v25 }
  0x84   :  { %v372_v60 = vadd.f32 %v1102_v29, %v370_v21 }
  0x86   :  { %v374_v22 = vadd.f32 %v1105_v33, %v372_v60 }
  0x88   :  { %v376_v6 = vadd.f32 %v1109_v40, %v374_v22  ;;  %v207_v40 = vadd.f32 %v206_v2, %v205_v55 }
  0x8a   :  { %v378_v23 = vadd.f32 %v1112_v42, %v376_v6  ;;  %v208_v15 = vrot.slane %v207_v40, 2 }
  0x8c   :  { %v380_v43 = vadd.f32 %v1115_v46, %v378_v23 }
  0x8e   :  { %v382_v45 = vadd.f32 %v1118_v47, %v380_v43 }
  0x90   :  { %v384_v51 = vadd.f32 %v1121_v39, %v382_v45 }
  0x92   :  { %v386_v4 = vadd.f32 %v1124_v48, %v384_v51  ;;  %v209_v48 = vadd.f32 %v208_v15, %v207_v40 }
  0x94   :  { %v388_v27 = vadd.f32 %v1128_v37, %v386_v4  ;;  %v210_v0 = vrot.slane %v209_v48, 1 }
  0x96   :  { %v390_v28 = vadd.f32 %v1131_v53, %v388_v27  ;;  %v211_v5 = vadd.f32 %v210_v0, %v209_v48 }
  0x98   :  { %v392_v29 = vadd.f32 %v1134_v54, %v390_v28 }
  0x9a   :  { %v394_v33 = vadd.f32 %v1137_v38, %v392_v29 }
  0x9c   :  { %v396_v42 = vadd.f32 %v1140_v59, %v394_v33  ;;  %v409_v59 = vld [vmem:[%s1295_s1] sm:$0x3] }
  0x9e   :  { %v398_v46 = vadd.f32 %v1143_v36, %v396_v42 }
  0xa0   :  { %v400_v47 = vadd.f32 %v1152_v52, %v398_v46 }
  0xa2   :  { %v402_v39 = vadd.f32 %v1155_v8, %v400_v47 }
  0xa4   :  { %v403_v58 = vrot.slane %v402_v39, 4 }
  0xa6   :  { %v404_v37 = vadd.f32 %v403_v58, %v402_v39 }
  0xa8   :  { %v405_v53 = vrot.slane %v404_v37, 2 }
  0xaa   :  { %v406_v61 = vadd.f32 %v405_v53, %v404_v37 }
  0xac   :  { %v407_v54 = vrot.slane %v406_v61, 1 }
  0xae   :  { %v408_v38 = vadd.f32 %v407_v54, %v406_v61 }
  0xb0   :  { %v411_v36 = vsel %vm410_vm2, %v211_v5, %v408_v38 }
  0xb1   :  { %v412_v17 = vadd.f32 %v411_v36, %v409_v59 }
  0xb3   :  { %414 = vst.msk [vmem:[%s1295_s1] sm:$0x3] %vm12_vm0, %v412_v17 }

// kernel: generator_forward.13
= control target key start
LH: loop header
LB: loop body
LE: loop exit
PB: predicated region body
PF: predicated region fallthrough
CT: control target
= control target key end

     0   :  { %vm328_vm0 = vcmask 130048   ;;  %vm714_vm1 = vcmask 392192   ;;  %s1566_s3 = inlined_call_operand.vmem [shape: bf16[16,48], index: 3, kind: input, shape index: {}]   ;;  %s1567_s0 = inlined_call_operand.vmem [shape: f32[512,16], index: 0, kind: input, shape index: {}]   ;;  %s1568_s1 = inlined_call_operand.vmem [shape: f32[1,16], index: 1, kind: input, shape index: {}]   ;;  %s1569_s2 = inlined_call_operand.vmem [shape: f32[1,16], index: 2, kind: input, shape index: {}]   ;;  %s1570_s4 = inlined_call_operand.vmem [shape: f32[512,48], index: 4, kind: output, shape index: {}]  }
   0x1   :  { %v919_v0 = vld [vmem:[%s1566_s3] sm:$0xff]   ;;  %v19_v2 = vld [vmem:[%s1567_s0 + $0x8] sm:$0xff]  ;;  %v20_v11 = vld [vmem:[%s1567_s0 + $0x10] sm:$0xff] }
   0x2   :  { %v18_v1 = vld [vmem:[%s1567_s0] sm:$0xff]  ;;  %851 = vmatprep.subr.bf16.mxu0 %v919_v0  ;;  %917 = vmatprep.subr.bf16.mxu1 %v919_v0  ;;  %v51_v8 = vld [vmem:[%s1567_s0 + $0x108] sm:$0xff]  ;;  %v21_v12 = vld [vmem:[%s1567_s0 + $0x18] sm:$0xff] }
   0x3   :  { %v957_v3 = vld [vmem:[%s1568_s1] ss:$0 sm:$0xff]  ;;  %852 = vmatpush3.bf16.msra.mxu0 %v919_v0  ;;  %918 = vmatpush3.bf16.msra.mxu1 %v919_v0  ;;  %v52_v13 = vld [vmem:[%s1567_s0 + $0x110] sm:$0xff]  ;;  %v53_v18 = vld [vmem:[%s1567_s0 + $0x118] sm:$0xff] }
   0x4   :  { %v89_v4 = vmul.f32 %v957_v3, %v18_v1  ;;  %v90_v5 = vmul.f32 %v957_v3, %v19_v2  ;;  %v964_v6 = vld [vmem:[%s1569_s2] ss:$0 sm:$0xff]  ;;  %v122_v10 = vmul.f32 %v957_v3, %v51_v8  ;;  %v91_v16 = vmul.f32 %v957_v3, %v20_v11  ;;  %v23_v28 = vld [vmem:[%s1567_s0 + $0x28] sm:$0xff]  ;;  %v24_v39 = vld [vmem:[%s1567_s0 + $0x30] sm:$0xff] }
   0x5   :  { %v50_v7 = vld [vmem:[%s1567_s0 + $0x100] sm:$0xff]  ;;  %v92_v17 = vmul.f32 %v957_v3, %v21_v12  ;;  %v123_v21 = vmul.f32 %v957_v3, %v52_v13  ;;  %v124_v22 = vmul.f32 %v957_v3, %v53_v18  ;;  %v55_v34 = vld [vmem:[%s1567_s0 + $0x128] sm:$0xff]  ;;  %v25_v40 = vld [vmem:[%s1567_s0 + $0x38] sm:$0xff]  ;;  %v94_v44 = vmul.f32 %v957_v3, %v23_v28 }
   0x6   :  { %v121_v9 = vmul.f32 %v957_v3, %v50_v7  ;;  %v160_v14 = vadd.f32 %v964_v6, %v89_v4  ;;  %v161_v15 = vadd.f32 %v964_v6, %v90_v5  ;;  %v193_v20 = vadd.f32 %v964_v6, %v122_v10  ;;  %v22_v23 = vld [vmem:[%s1567_s0 + $0x20] sm:$0xff]  ;;  %v56_v45 = vld [vmem:[%s1567_s0 + $0x130] sm:$0xff]  ;;  %v57_v50 = vld [vmem:[%s1567_s0 + $0x138] sm:$0xff] }
   0x7   :  { %v162_v26 = vadd.f32 %v964_v6, %v91_v16  ;;  %v163_v27 = vadd.f32 %v964_v6, %v92_v17  ;;  %v194_v31 = vadd.f32 %v964_v6, %v123_v21  ;;  %v195_v32 = vadd.f32 %v964_v6, %v124_v22  ;;  %v54_v33 = vld [vmem:[%s1567_s0 + $0x120] sm:$0xff]  ;;  %v27_v0 = vld [vmem:[%s1567_s0 + $0x48] sm:$0xff]  ;;  %v28_v13 = vld [vmem:[%s1567_s0 + $0x50] sm:$0xff] }
   0x8   :  { %v192_v19 = vadd.f32 %v964_v6, %v121_v9  ;;  %v224_v24 = vmax.f32 %v160_v14, 0.0  ;;  %v225_v25 = vmax.f32 %v161_v15, 0.0  ;;  %v257_v30 = vmax.f32 %v193_v20, 0.0  ;;  %v26_v55 = vld [vmem:[%s1567_s0 + $0x40] sm:$0xff]  ;;  %v59_v8 = vld [vmem:[%s1567_s0 + $0x148] sm:$0xff]  ;;  %v29_v14 = vld [vmem:[%s1567_s0 + $0x58] sm:$0xff] }
   0x9   :  { %v226_v36 = vmax.f32 %v162_v26, 0.0  ;;  %v227_v37 = vmax.f32 %v163_v27, 0.0  ;;  %v93_v38 = vmul.f32 %v957_v3, %v22_v23  ;;  %v258_v42 = vmax.f32 %v194_v31, 0.0  ;;  %v58_v7 = vld [vmem:[%s1567_s0 + $0x140] sm:$0xff] }
   0xa   :  { %v256_v29 = vmax.f32 %v192_v19, 0.0  ;;  %v288_v35 = vpack.c.bf16 %v225_v25, %v224_v24  ;;  %v259_v43 = vmax.f32 %v195_v32, 0.0  ;;  %v125_v48 = vmul.f32 %v957_v3, %v54_v33  ;;  %v60_v19 = vld [vmem:[%s1567_s0 + $0x150] sm:$0xff]  ;;  %v61_v24 = vld [vmem:[%s1567_s0 + $0x158] sm:$0xff] }
   0xb   :  { %v289_v46 = vpack.c.bf16 %v227_v37, %v226_v36  ;;  %v164_v47 = vadd.f32 %v964_v6, %v93_v38  ;;  %v126_v49 = vmul.f32 %v957_v3, %v55_v34  ;;  %v165_v52 = vadd.f32 %v964_v6, %v94_v44  ;;  %v31_v38 = vld [vmem:[%s1567_s0 + $0x68] sm:$0xff] }
   0xc   :  { %v304_v41 = vpack.c.bf16 %v257_v30, %v256_v29  ;;  %853 = vmatprep.mubr.msk.bf16.mxu0 %vm328_vm0, %v288_v35  ;;  %v305_v51 = vpack.c.bf16 %v259_v43, %v258_v42  ;;  %v95_v53 = vmul.f32 %v957_v3, %v24_v39  ;;  %v96_v54 = vmul.f32 %v957_v3, %v25_v40  ;;  %v30_v29 = vld [vmem:[%s1567_s0 + $0x60] sm:$0xff]  ;;  %v63_v44 = vld [vmem:[%s1567_s0 + $0x168] sm:$0xff] }
   0xd   :  { %854 = vmatmul.mubr.msk.bf16.vlgmr.msra.gmra.mrb[0].mxu0 %vm328_vm0, %v289_v46  ;;  %v228_v56 = vmax.f32 %v164_v47, 0.0  ;;  %v196_v57 = vadd.f32 %v964_v6, %v125_v48  ;;  %v197_v58 = vadd.f32 %v964_v6, %v126_v49  ;;  %v127_v59 = vmul.f32 %v957_v3, %v56_v45  ;;  %v62_v43 = vld [vmem:[%s1567_s0 + $0x160] sm:$0xff]  ;;  %v32_v49 = vld [vmem:[%s1567_s0 + $0x70] sm:$0xff] }
   0xe   :  { %885 = vmatprep.mubr.msk.bf16.mxu1 %vm328_vm0, %v304_v41  ;;  %v229_v60 = vmax.f32 %v165_v52, 0.0  ;;  %v166_v61 = vadd.f32 %v964_v6, %v95_v53  ;;  %v167_v62 = vadd.f32 %v964_v6, %v96_v54  ;;  %v128_v63 = vmul.f32 %v957_v3, %v57_v50  ;;  %v33_v50 = vld [vmem:[%s1567_s0 + $0x78] sm:$0xff] }
   0xf   :  { %886 = vmatmul.mubr.msk.bf16.vlgmr.msra.gmra.mrb[0].mxu1 %vm328_vm0, %v305_v51  ;;  %v260_v1 = vmax.f32 %v196_v57, 0.0  ;;  %v261_v2 = vmax.f32 %v197_v58, 0.0  ;;  %v198_v4 = vadd.f32 %v964_v6, %v127_v59  ;;  %v97_v5 = vmul.f32 %v957_v3, %v26_v55  ;;  %v64_v55 = vld [vmem:[%s1567_s0 + $0x170] sm:$0xff] }
  0x10   :  { %v290_v9 = vpack.c.bf16 %v229_v60, %v228_v56  ;;  %v230_v10 = vmax.f32 %v166_v61, 0.0  ;;  %v231_v11 = vmax.f32 %v167_v62, 0.0  ;;  %v199_v12 = vadd.f32 %v964_v6, %v128_v63  ;;  %v65_v60 = vld [vmem:[%s1567_s0 + $0x178] sm:$0xff] }
  0x11   :  { %v306_v15 = vpack.c.bf16 %v261_v2, %v260_v1  ;;  %v262_v16 = vmax.f32 %v198_v4, 0.0  ;;  %v98_v17 = vmul.f32 %v957_v3, %v27_v0  ;;  %v168_v18 = vadd.f32 %v964_v6, %v97_v5  ;;  %v34_v1 = vld [vmem:[%s1567_s0 + $0x80] sm:$0xff] }
  0x12   :  { %857 = vmatprep.mubr.msk.bf16.mxu0 %vm328_vm0, %v290_v9  ;;  %v291_v20 = vpack.c.bf16 %v231_v11, %v230_v10  ;;  %v263_v21 = vmax.f32 %v199_v12, 0.0  ;;  %v129_v22 = vmul.f32 %v957_v3, %v58_v7  ;;  %v130_v23 = vmul.f32 %v957_v3, %v59_v8  ;;  %v35_v12 = vld [vmem:[%s1567_s0 + $0x88] sm:$0xff] }
  0x13   :  { %889 = vmatprep.mubr.msk.bf16.mxu1 %vm328_vm0, %v306_v15  ;;  %v169_v25 = vadd.f32 %v964_v6, %v98_v17  ;;  %v232_v26 = vmax.f32 %v168_v18, 0.0  ;;  %v99_v27 = vmul.f32 %v957_v3, %v28_v13  ;;  %v100_v28 = vmul.f32 %v957_v3, %v29_v14  ;;  %v66_v17 = vld [vmem:[%s1567_s0 + $0x180] sm:$0xff]  ;;  %v67_v18 = vld [vmem:[%s1567_s0 + $0x188] sm:$0xff] }
  0x14   :  { %v307_v30 = vpack.c.bf16 %v263_v21, %v262_v16  ;;  %v200_v31 = vadd.f32 %v964_v6, %v129_v22  ;;  %v201_v32 = vadd.f32 %v964_v6, %v130_v23  ;;  %v131_v33 = vmul.f32 %v957_v3, %v60_v19  ;;  %v36_v23 = vld [vmem:[%s1567_s0 + $0x90] sm:$0xff] }
  0x15   :  { %858 = vmatmul.mubr.msk.bf16.gmra.mrb[4].mxu0 %vm328_vm0, %v291_v20  ;;  %v233_v34 = vmax.f32 %v169_v25, 0.0  ;;  %v170_v35 = vadd.f32 %v964_v6, %v99_v27  ;;  %v171_v36 = vadd.f32 %v964_v6, %v100_v28  ;;  %v132_v37 = vmul.f32 %v957_v3, %v61_v24  ;;  %v37_v24 = vld [vmem:[%s1567_s0 + $0x98] sm:$0xff] }
  0x16   :  { %v264_v39 = vmax.f32 %v200_v31, 0.0  ;;  %v265_v40 = vmax.f32 %v201_v32, 0.0  ;;  %v202_v41 = vadd.f32 %v964_v6, %v131_v33  ;;  %v101_v42 = vmul.f32 %v957_v3, %v30_v29  ;;  %v68_v29 = vld [vmem:[%s1567_s0 + $0x190] sm:$0xff] }
  0x17   :  { %890 = vmatmul.mubr.msk.bf16.gmra.mrb[4].mxu1 %vm328_vm0, %v307_v30  ;;  %v292_v45 = vpack.c.bf16 %v233_v34, %v232_v26  ;;  %v234_v46 = vmax.f32 %v170_v35, 0.0  ;;  %v235_v47 = vmax.f32 %v171_v36, 0.0  ;;  %v203_v48 = vadd.f32 %v964_v6, %v132_v37  ;;  %v69_v34 = vld [vmem:[%s1567_s0 + $0x198] sm:$0xff] }
  0x18   :  { %v308_v51 = vpack.c.bf16 %v265_v40, %v264_v39  ;;  %v266_v52 = vmax.f32 %v202_v41, 0.0  ;;  %v102_v53 = vmul.f32 %v957_v3, %v31_v38  ;;  %v172_v54 = vadd.f32 %v964_v6, %v101_v42  ;;  %v38_v39 = vld [vmem:[%s1567_s0 + $0xa0] sm:$0xff] }
  0x19   :  { %861 = vmatprep.mubr.msk.bf16.mxu0 %vm328_vm0, %v292_v45  ;;  %v293_v56 = vpack.c.bf16 %v235_v47, %v234_v46  ;;  %v267_v57 = vmax.f32 %v203_v48, 0.0  ;;  %v133_v58 = vmul.f32 %v957_v3, %v62_v43  ;;  %v134_v59 = vmul.f32 %v957_v3, %v63_v44  ;;  %v39_v48 = vld [vmem:[%s1567_s0 + $0xa8] sm:$0xff] }
  0x1a   :  { %893 = vmatprep.mubr.msk.bf16.mxu1 %vm328_vm0, %v308_v51  ;;  %v173_v61 = vadd.f32 %v964_v6, %v102_v53  ;;  %v236_v62 = vmax.f32 %v172_v54, 0.0  ;;  %v103_v63 = vmul.f32 %v957_v3, %v32_v49  ;;  %v104_v0 = vmul.f32 %v957_v3, %v33_v50  ;;  %v70_v53 = vld [vmem:[%s1567_s0 + $0x1a0] sm:$0xff]  ;;  %v71_v54 = vld [vmem:[%s1567_s0 + $0x1a8] sm:$0xff] }
  0x1b   :  { %v309_v2 = vpack.c.bf16 %v267_v57, %v266_v52  ;;  %v204_v4 = vadd.f32 %v964_v6, %v133_v58  ;;  %v205_v5 = vadd.f32 %v964_v6, %v134_v59  ;;  %v135_v7 = vmul.f32 %v957_v3, %v64_v55  ;;  %v40_v59 = vld [vmem:[%s1567_s0 + $0xb0] sm:$0xff] }
  0x1c   :  { %v237_v8 = vmax.f32 %v173_v61, 0.0  ;;  %v174_v9 = vadd.f32 %v964_v6, %v103_v63  ;;  %v175_v10 = vadd.f32 %v964_v6, %v104_v0  ;;  %v136_v11 = vmul.f32 %v957_v3, %v65_v60  ;;  %v41_v60 = vld [vmem:[%s1567_s0 + $0xb8] sm:$0xff] }
  0x1d   :  { %862 = vmatmul.mubr.msk.bf16.gmra.mrb[8].mxu0 %vm328_vm0, %v293_v56  ;;  %v268_v13 = vmax.f32 %v204_v4, 0.0  ;;  %v269_v14 = vmax.f32 %v205_v5, 0.0  ;;  %v206_v15 = vadd.f32 %v964_v6, %v135_v7  ;;  %v105_v16 = vmul.f32 %v957_v3, %v34_v1  ;;  %v72_v1 = vld [vmem:[%s1567_s0 + $0x1b0] sm:$0xff] }
  0x1e   :  { %v294_v19 = vpack.c.bf16 %v237_v8, %v236_v62  ;;  %v238_v20 = vmax.f32 %v174_v9, 0.0  ;;  %v239_v21 = vmax.f32 %v175_v10, 0.0  ;;  %v207_v22 = vadd.f32 %v964_v6, %v136_v11  ;;  %v73_v8 = vld [vmem:[%s1567_s0 + $0x1b8] sm:$0xff] }
  0x1f   :  { %894 = vmatmul.mubr.msk.bf16.gmra.mrb[8].mxu1 %vm328_vm0, %v309_v2  ;;  %v310_v25 = vpack.c.bf16 %v269_v14, %v268_v13  ;;  %v270_v26 = vmax.f32 %v206_v15, 0.0  ;;  %v106_v27 = vmul.f32 %v957_v3, %v35_v12  ;;  %v176_v28 = vadd.f32 %v964_v6, %v105_v16  ;;  %v42_v13 = vld [vmem:[%s1567_s0 + $0xc0] sm:$0xff] }
  0x20   :  { %865 = vmatprep.mubr.msk.bf16.mxu0 %vm328_vm0, %v294_v19  ;;  %v295_v30 = vpack.c.bf16 %v239_v21, %v238_v20  ;;  %v271_v31 = vmax.f32 %v207_v22, 0.0  ;;  %v137_v32 = vmul.f32 %v957_v3, %v66_v17  ;;  %v138_v33 = vmul.f32 %v957_v3, %v67_v18  ;;  %v43_v22 = vld [vmem:[%s1567_s0 + $0xc8] sm:$0xff] }
  0x21   :  { %897 = vmatprep.mubr.msk.bf16.mxu1 %vm328_vm0, %v310_v25  ;;  %v177_v35 = vadd.f32 %v964_v6, %v106_v27  ;;  %v240_v36 = vmax.f32 %v176_v28, 0.0  ;;  %v107_v37 = vmul.f32 %v957_v3, %v36_v23  ;;  %v108_v38 = vmul.f32 %v957_v3, %v37_v24  ;;  %v74_v27 = vld [vmem:[%s1567_s0 + $0x1c0] sm:$0xff]  ;;  %v75_v28 = vld [vmem:[%s1567_s0 + $0x1c8] sm:$0xff] }
  0x22   :  { %v311_v40 = vpack.c.bf16 %v271_v31, %v270_v26  ;;  %v208_v41 = vadd.f32 %v964_v6, %v137_v32  ;;  %v209_v42 = vadd.f32 %v964_v6, %v138_v33  ;;  %v139_v43 = vmul.f32 %v957_v3, %v68_v29  ;;  %v44_v33 = vld [vmem:[%s1567_s0 + $0xd0] sm:$0xff] }
  0x23   :  { %v241_v44 = vmax.f32 %v177_v35, 0.0  ;;  %v178_v45 = vadd.f32 %v964_v6, %v107_v37  ;;  %v179_v46 = vadd.f32 %v964_v6, %v108_v38  ;;  %v140_v47 = vmul.f32 %v957_v3, %v69_v34  ;;  %v45_v34 = vld [vmem:[%s1567_s0 + $0xd8] sm:$0xff] }
  0x24   :  { %v272_v49 = vmax.f32 %v208_v41, 0.0  ;;  %v273_v50 = vmax.f32 %v209_v42, 0.0  ;;  %v210_v51 = vadd.f32 %v964_v6, %v139_v43  ;;  %v109_v52 = vmul.f32 %v957_v3, %v38_v39  ;;  %v76_v39 = vld [vmem:[%s1567_s0 + $0x1d0] sm:$0xff] }
  0x25   :  { %866 = vmatmul.mubr.msk.bf16.gmra.mrb[12].mxu0 %vm328_vm0, %v295_v30  ;;  %v296_v55 = vpack.c.bf16 %v241_v44, %v240_v36  ;;  %v242_v56 = vmax.f32 %v178_v45, 0.0  ;;  %v243_v57 = vmax.f32 %v179_v46, 0.0  ;;  %v211_v58 = vadd.f32 %v964_v6, %v140_v47  ;;  %v77_v44 = vld [vmem:[%s1567_s0 + $0x1d8] sm:$0xff] }
  0x26   :  { %v312_v61 = vpack.c.bf16 %v273_v50, %v272_v49  ;;  %v274_v62 = vmax.f32 %v210_v51, 0.0  ;;  %v110_v63 = vmul.f32 %v957_v3, %v39_v48  ;;  %v180_v0 = vadd.f32 %v964_v6, %v109_v52  ;;  %v46_v49 = vld [vmem:[%s1567_s0 + $0xe0] sm:$0xff] }
  0x27   :  { %898 = vmatmul.mubr.msk.bf16.gmra.mrb[12].mxu1 %vm328_vm0, %v311_v40  ;;  %869 = vmatprep.mubr.msk.bf16.mxu0 %vm328_vm0, %v296_v55  ;;  %v297_v2 = vpack.c.bf16 %v243_v57, %v242_v56  ;;  %v275_v4 = vmax.f32 %v211_v58, 0.0  ;;  %v141_v5 = vmul.f32 %v957_v3, %v70_v53  ;;  %v142_v7 = vmul.f32 %v957_v3, %v71_v54  ;;  %v47_v58 = vld [vmem:[%s1567_s0 + $0xe8] sm:$0xff] }
  0x28   :  { %901 = vmatprep.mubr.msk.bf16.mxu1 %vm328_vm0, %v312_v61  ;;  %v181_v9 = vadd.f32 %v964_v6, %v110_v63  ;;  %v244_v10 = vmax.f32 %v180_v0, 0.0  ;;  %v111_v11 = vmul.f32 %v957_v3, %v40_v59  ;;  %v112_v12 = vmul.f32 %v957_v3, %v41_v60  ;;  %v78_v63 = vld [vmem:[%s1567_s0 + $0x1e0] sm:$0xff]  ;;  %v79_v0 = vld [vmem:[%s1567_s0 + $0x1e8] sm:$0xff] }
  0x29   :  { %v313_v14 = vpack.c.bf16 %v275_v4, %v274_v62  ;;  %v212_v15 = vadd.f32 %v964_v6, %v141_v5  ;;  %v213_v16 = vadd.f32 %v964_v6, %v142_v7  ;;  %v143_v17 = vmul.f32 %v957_v3, %v72_v1  ;;  %v48_v5 = vld [vmem:[%s1567_s0 + $0xf0] sm:$0xff]  ;;  %v49_v7 = vld [vmem:[%s1567_s0 + $0xf8] sm:$0xff] }
  0x2a   :  { %v245_v18 = vmax.f32 %v181_v9, 0.0  ;;  %v182_v19 = vadd.f32 %v964_v6, %v111_v11  ;;  %v183_v20 = vadd.f32 %v964_v6, %v112_v12  ;;  %v144_v21 = vmul.f32 %v957_v3, %v73_v8  ;;  %v80_v12 = vld [vmem:[%s1567_s0 + $0x1f0] sm:$0xff] }
  0x2b   :  { %v276_v23 = vmax.f32 %v212_v15, 0.0  ;;  %v277_v24 = vmax.f32 %v213_v16, 0.0  ;;  %v214_v25 = vadd.f32 %v964_v6, %v143_v17  ;;  %v113_v26 = vmul.f32 %v957_v3, %v42_v13  ;;  %v81_v17 = vld [vmem:[%s1567_s0 + $0x1f8] sm:$0xff] }
  0x2c   :  { %v298_v29 = vpack.c.bf16 %v245_v18, %v244_v10  ;;  %v246_v30 = vmax.f32 %v182_v19, 0.0  ;;  %v247_v31 = vmax.f32 %v183_v20, 0.0  ;;  %v215_v32 = vadd.f32 %v964_v6, %v144_v21 }
  0x2d   :  { %870 = vmatmul.mubr.msk.bf16.gmra.mrb[16].mxu0 %vm328_vm0, %v297_v2  ;;  %v314_v35 = vpack.c.bf16 %v277_v24, %v276_v23  ;;  %v278_v36 = vmax.f32 %v214_v25, 0.0  ;;  %v114_v37 = vmul.f32 %v957_v3, %v43_v22  ;;  %v184_v38 = vadd.f32 %v964_v6, %v113_v26 }
  0x2e   :  { %873 = vmatprep.mubr.msk.bf16.mxu0 %vm328_vm0, %v298_v29  ;;  %v299_v40 = vpack.c.bf16 %v247_v31, %v246_v30  ;;  %v279_v41 = vmax.f32 %v215_v32, 0.0  ;;  %v145_v42 = vmul.f32 %v957_v3, %v74_v27  ;;  %v146_v43 = vmul.f32 %v957_v3, %v75_v28 }
  0x2f   :  { %902 = vmatmul.mubr.msk.bf16.gmra.mrb[16].mxu1 %vm328_vm0, %v313_v14  ;;  %v185_v45 = vadd.f32 %v964_v6, %v114_v37  ;;  %v248_v46 = vmax.f32 %v184_v38, 0.0  ;;  %v115_v47 = vmul.f32 %v957_v3, %v44_v33  ;;  %v116_v48 = vmul.f32 %v957_v3, %v45_v34 }
  0x30   :  { %905 = vmatprep.mubr.msk.bf16.mxu1 %vm328_vm0, %v314_v35  ;;  %v315_v50 = vpack.c.bf16 %v279_v41, %v278_v36  ;;  %v216_v51 = vadd.f32 %v964_v6, %v145_v42  ;;  %v217_v52 = vadd.f32 %v964_v6, %v146_v43  ;;  %v147_v53 = vmul.f32 %v957_v3, %v76_v39 }
  0x31   :  { %v249_v54 = vmax.f32 %v185_v45, 0.0  ;;  %v186_v55 = vadd.f32 %v964_v6, %v115_v47  ;;  %v187_v56 = vadd.f32 %v964_v6, %v116_v48  ;;  %v148_v57 = vmul.f32 %v957_v3, %v77_v44 }
  0x32   :  { %v280_v59 = vmax.f32 %v216_v51, 0.0  ;;  %v281_v60 = vmax.f32 %v217_v52, 0.0  ;;  %v218_v61 = vadd.f32 %v964_v6, %v147_v53  ;;  %v117_v62 = vmul.f32 %v957_v3, %v46_v49 }
  0x33   :  { %v300_v1 = vpack.c.bf16 %v249_v54, %v248_v46  ;;  %v250_v2 = vmax.f32 %v186_v55, 0.0  ;;  %v219_v4 = vadd.f32 %v964_v6, %v148_v57  ;;  %v251_v9 = vmax.f32 %v187_v56, 0.0 }
  0x34   :  { %v316_v8 = vpack.c.bf16 %v281_v60, %v280_v59  ;;  %v118_v10 = vmul.f32 %v957_v3, %v47_v58  ;;  %v188_v11 = vadd.f32 %v964_v6, %v117_v62  ;;  %v282_v13 = vmax.f32 %v218_v61, 0.0 }
  0x35   :  { %874 = vmatmul.mubr.msk.bf16.gmra.mrb[20].mxu0 %vm328_vm0, %v299_v40  ;;  %v283_v14 = vmax.f32 %v219_v4, 0.0  ;;  %v149_v15 = vmul.f32 %v957_v3, %v78_v63  ;;  %v150_v16 = vmul.f32 %v957_v3, %v79_v0  ;;  %v119_v20 = vmul.f32 %v957_v3, %v48_v5 }
  0x36   :  { %877 = vmatprep.mubr.msk.bf16.mxu0 %vm328_vm0, %v300_v1  ;;  %v189_v18 = vadd.f32 %v964_v6, %v118_v10  ;;  %v252_v19 = vmax.f32 %v188_v11, 0.0  ;;  %v120_v21 = vmul.f32 %v957_v3, %v49_v7  ;;  %v151_v24 = vmul.f32 %v957_v3, %v80_v12 }
  0x37   :  { %906 = vmatmul.mubr.msk.bf16.gmra.mrb[20].mxu1 %vm328_vm0, %v315_v50  ;;  %v220_v22 = vadd.f32 %v964_v6, %v149_v15  ;;  %v221_v23 = vadd.f32 %v964_v6, %v150_v16  ;;  %v301_v25 = vpack.c.bf16 %v251_v9, %v250_v2  ;;  %v152_v27 = vmul.f32 %v957_v3, %v81_v17 }
  0x38   :  { %909 = vmatprep.mubr.msk.bf16.mxu1 %vm328_vm0, %v316_v8  ;;  %v253_v26 = vmax.f32 %v189_v18, 0.0  ;;  %v190_v30 = vadd.f32 %v964_v6, %v119_v20  ;;  %v191_v31 = vadd.f32 %v964_v6, %v120_v21  ;;  %v317_v32 = vpack.c.bf16 %v283_v14, %v282_v13 }
  0x39   :  { %v284_v28 = vmax.f32 %v220_v22, 0.0  ;;  %v285_v29 = vmax.f32 %v221_v23, 0.0  ;;  %v222_v34 = vadd.f32 %v964_v6, %v151_v24  ;;  %v223_v35 = vadd.f32 %v964_v6, %v152_v27 }
  0x3a   :  { %v302_v33 = vpack.c.bf16 %v253_v26, %v252_v19  ;;  %v254_v37 = vmax.f32 %v190_v30, 0.0  ;;  %v255_v38 = vmax.f32 %v191_v31, 0.0 }
  0x3b   :  { %v318_v36 = vpack.c.bf16 %v285_v29, %v284_v28  ;;  %v286_v3 = vmax.f32 %v222_v34, 0.0  ;;  %v287_v39 = vmax.f32 %v223_v35, 0.0 }
  0x3c   :  { %v303_v40 = vpack.c.bf16 %v255_v38, %v254_v37 }
  0x3d   :  { %878 = vmatmul.mubr.msk.bf16.gmra.mrb[24].mxu0 %vm328_vm0, %v301_v25  ;;  %v319_v41 = vpack.c.bf16 %v287_v39, %v286_v3 }
  0x3e   :  { %881 = vmatprep.mubr.msk.bf16.mxu0 %vm328_vm0, %v302_v33 }
  0x3f   :  { %910 = vmatmul.mubr.msk.bf16.gmra.mrb[24].mxu1 %vm328_vm0, %v317_v32 }
  0x40   :  { %913 = vmatprep.mubr.msk.bf16.mxu1 %vm328_vm0, %v318_v36 }
  0x45   :  { %882 = vmatmul.mubr.msk.bf16.gmra.mrb[28].mxu0 %vm328_vm0, %v303_v40 }
  0x47   :  { %914 = vmatmul.mubr.msk.bf16.gmra.mrb[28].mxu1 %vm328_vm0, %v319_v41 }
  0xe0   :  { %v855_v6 = vpop.f32.mrb[0].mxu0 }
  0xe1   :  { %717 = vst.msk [vmem:[%s1570_s4 + $0x10] sm:$0xff] %vm714_vm1, %v855_v6  ;;  %v459_v43 = vpop.f32.mrb[1].mxu0 }
  0xe2   :  { %v887_v42 = vpop.f32.mrb[0].mxu1  ;;  %715 = vst.msk [vmem:[%s1570_s4] sm:$0xff] %vm714_vm1, %v459_v43  ;;  %v856_v45 = vpop.f32.mrb[2].mxu0 }
  0xe3   :  { %749 = vst.msk [vmem:[%s1570_s4 + $0x110] sm:$0xff] %vm714_vm1, %v887_v42  ;;  %v587_v44 = vpop.f32.mrb[1].mxu1  ;;  %718 = vst.msk [vmem:[%s1570_s4 + $0x18] sm:$0xff] %vm714_vm1, %v856_v45  ;;  %v462_v47 = vpop.f32.mrb[3].mxu0 }
  0xe4   :  { %747 = vst.msk [vmem:[%s1570_s4 + $0x100] sm:$0xff] %vm714_vm1, %v587_v44  ;;  %v888_v46 = vpop.f32.mrb[2].mxu1  ;;  %716 = vst.msk [vmem:[%s1570_s4 + $0x8] sm:$0xff] %vm714_vm1, %v462_v47 }
  0xe5   :  { %750 = vst.msk [vmem:[%s1570_s4 + $0x118] sm:$0xff] %vm714_vm1, %v888_v46  ;;  %v590_v48 = vpop.f32.mrb[3].mxu1 }
  0xe6   :  { %748 = vst.msk [vmem:[%s1570_s4 + $0x108] sm:$0xff] %vm714_vm1, %v590_v48 }
  0xe8   :  { %v859_v49 = vpop.f32.mrb[4].mxu0 }
  0xe9   :  { %721 = vst.msk [vmem:[%s1570_s4 + $0x30] sm:$0xff] %vm714_vm1, %v859_v49  ;;  %v475_v51 = vpop.f32.mrb[5].mxu0 }
  0xea   :  { %v891_v50 = vpop.f32.mrb[4].mxu1  ;;  %719 = vst.msk [vmem:[%s1570_s4 + $0x20] sm:$0xff] %vm714_vm1, %v475_v51  ;;  %v860_v53 = vpop.f32.mrb[6].mxu0 }
  0xeb   :  { %753 = vst.msk [vmem:[%s1570_s4 + $0x130] sm:$0xff] %vm714_vm1, %v891_v50  ;;  %v603_v52 = vpop.f32.mrb[5].mxu1  ;;  %722 = vst.msk [vmem:[%s1570_s4 + $0x38] sm:$0xff] %vm714_vm1, %v860_v53  ;;  %v478_v55 = vpop.f32.mrb[7].mxu0 }
  0xec   :  { %751 = vst.msk [vmem:[%s1570_s4 + $0x120] sm:$0xff] %vm714_vm1, %v603_v52  ;;  %v892_v54 = vpop.f32.mrb[6].mxu1  ;;  %720 = vst.msk [vmem:[%s1570_s4 + $0x28] sm:$0xff] %vm714_vm1, %v478_v55 }
  0xed   :  { %754 = vst.msk [vmem:[%s1570_s4 + $0x138] sm:$0xff] %vm714_vm1, %v892_v54  ;;  %v606_v56 = vpop.f32.mrb[7].mxu1 }
  0xee   :  { %752 = vst.msk [vmem:[%s1570_s4 + $0x128] sm:$0xff] %vm714_vm1, %v606_v56 }
  0xf0   :  { %v863_v57 = vpop.f32.mrb[8].mxu0 }
  0xf1   :  { %725 = vst.msk [vmem:[%s1570_s4 + $0x50] sm:$0xff] %vm714_vm1, %v863_v57  ;;  %v491_v59 = vpop.f32.mrb[9].mxu0 }
  0xf2   :  { %v895_v58 = vpop.f32.mrb[8].mxu1  ;;  %723 = vst.msk [vmem:[%s1570_s4 + $0x40] sm:$0xff] %vm714_vm1, %v491_v59  ;;  %v864_v61 = vpop.f32.mrb[10].mxu0 }
  0xf3   :  { %757 = vst.msk [vmem:[%s1570_s4 + $0x150] sm:$0xff] %vm714_vm1, %v895_v58  ;;  %v619_v60 = vpop.f32.mrb[9].mxu1  ;;  %726 = vst.msk [vmem:[%s1570_s4 + $0x58] sm:$0xff] %vm714_vm1, %v864_v61  ;;  %v494_v63 = vpop.f32.mrb[11].mxu0 }
  0xf4   :  { %755 = vst.msk [vmem:[%s1570_s4 + $0x140] sm:$0xff] %vm714_vm1, %v619_v60  ;;  %v896_v62 = vpop.f32.mrb[10].mxu1  ;;  %724 = vst.msk [vmem:[%s1570_s4 + $0x48] sm:$0xff] %vm714_vm1, %v494_v63 }
  0xf5   :  { %758 = vst.msk [vmem:[%s1570_s4 + $0x158] sm:$0xff] %vm714_vm1, %v896_v62  ;;  %v622_v0 = vpop.f32.mrb[11].mxu1 }
  0xf6   :  { %756 = vst.msk [vmem:[%s1570_s4 + $0x148] sm:$0xff] %vm714_vm1, %v622_v0 }
  0xf8   :  { %v867_v1 = vpop.f32.mrb[12].mxu0 }
  0xf9   :  { %729 = vst.msk [vmem:[%s1570_s4 + $0x70] sm:$0xff] %vm714_vm1, %v867_v1  ;;  %v507_v4 = vpop.f32.mrb[13].mxu0 }
  0xfa   :  { %v899_v2 = vpop.f32.mrb[12].mxu1  ;;  %727 = vst.msk [vmem:[%s1570_s4 + $0x60] sm:$0xff] %vm714_vm1, %v507_v4  ;;  %v868_v7 = vpop.f32.mrb[14].mxu0 }
  0xfb   :  { %761 = vst.msk [vmem:[%s1570_s4 + $0x170] sm:$0xff] %vm714_vm1, %v899_v2  ;;  %v635_v5 = vpop.f32.mrb[13].mxu1  ;;  %730 = vst.msk [vmem:[%s1570_s4 + $0x78] sm:$0xff] %vm714_vm1, %v868_v7  ;;  %v510_v9 = vpop.f32.mrb[15].mxu0 }
  0xfc   :  { %759 = vst.msk [vmem:[%s1570_s4 + $0x160] sm:$0xff] %vm714_vm1, %v635_v5  ;;  %v900_v8 = vpop.f32.mrb[14].mxu1  ;;  %728 = vst.msk [vmem:[%s1570_s4 + $0x68] sm:$0xff] %vm714_vm1, %v510_v9 }
  0xfd   :  { %762 = vst.msk [vmem:[%s1570_s4 + $0x178] sm:$0xff] %vm714_vm1, %v900_v8  ;;  %v638_v10 = vpop.f32.mrb[15].mxu1 }
  0xfe   :  { %760 = vst.msk [vmem:[%s1570_s4 + $0x168] sm:$0xff] %vm714_vm1, %v638_v10 }
 0x100   :  { %v871_v11 = vpop.f32.mrb[16].mxu0 }
 0x101   :  { %733 = vst.msk [vmem:[%s1570_s4 + $0x90] sm:$0xff] %vm714_vm1, %v871_v11  ;;  %v523_v13 = vpop.f32.mrb[17].mxu0 }
 0x102   :  { %v903_v12 = vpop.f32.mrb[16].mxu1  ;;  %731 = vst.msk [vmem:[%s1570_s4 + $0x80] sm:$0xff] %vm714_vm1, %v523_v13  ;;  %v872_v15 = vpop.f32.mrb[18].mxu0 }
 0x103   :  { %765 = vst.msk [vmem:[%s1570_s4 + $0x190] sm:$0xff] %vm714_vm1, %v903_v12  ;;  %v651_v14 = vpop.f32.mrb[17].mxu1  ;;  %734 = vst.msk [vmem:[%s1570_s4 + $0x98] sm:$0xff] %vm714_vm1, %v872_v15  ;;  %v526_v17 = vpop.f32.mrb[19].mxu0 }
 0x104   :  { %763 = vst.msk [vmem:[%s1570_s4 + $0x180] sm:$0xff] %vm714_vm1, %v651_v14  ;;  %v904_v16 = vpop.f32.mrb[18].mxu1  ;;  %732 = vst.msk [vmem:[%s1570_s4 + $0x88] sm:$0xff] %vm714_vm1, %v526_v17 }
 0x105   :  { %766 = vst.msk [vmem:[%s1570_s4 + $0x198] sm:$0xff] %vm714_vm1, %v904_v16  ;;  %v654_v18 = vpop.f32.mrb[19].mxu1 }
 0x106   :  { %764 = vst.msk [vmem:[%s1570_s4 + $0x188] sm:$0xff] %vm714_vm1, %v654_v18 }
 0x108   :  { %v875_v19 = vpop.f32.mrb[20].mxu0 }
 0x109   :  { %737 = vst.msk [vmem:[%s1570_s4 + $0xb0] sm:$0xff] %vm714_vm1, %v875_v19  ;;  %v539_v21 = vpop.f32.mrb[21].mxu0 }
 0x10a   :  { %v907_v20 = vpop.f32.mrb[20].mxu1  ;;  %735 = vst.msk [vmem:[%s1570_s4 + $0xa0] sm:$0xff] %vm714_vm1, %v539_v21  ;;  %v876_v23 = vpop.f32.mrb[22].mxu0 }
 0x10b   :  { %769 = vst.msk [vmem:[%s1570_s4 + $0x1b0] sm:$0xff] %vm714_vm1, %v907_v20  ;;  %v667_v22 = vpop.f32.mrb[21].mxu1  ;;  %738 = vst.msk [vmem:[%s1570_s4 + $0xb8] sm:$0xff] %vm714_vm1, %v876_v23  ;;  %v542_v25 = vpop.f32.mrb[23].mxu0 }
 0x10c   :  { %767 = vst.msk [vmem:[%s1570_s4 + $0x1a0] sm:$0xff] %vm714_vm1, %v667_v22  ;;  %v908_v24 = vpop.f32.mrb[22].mxu1  ;;  %736 = vst.msk [vmem:[%s1570_s4 + $0xa8] sm:$0xff] %vm714_vm1, %v542_v25 }
 0x10d   :  { %770 = vst.msk [vmem:[%s1570_s4 + $0x1b8] sm:$0xff] %vm714_vm1, %v908_v24  ;;  %v670_v26 = vpop.f32.mrb[23].mxu1 }
 0x10e   :  { %768 = vst.msk [vmem:[%s1570_s4 + $0x1a8] sm:$0xff] %vm714_vm1, %v670_v26 }
 0x110   :  { %v879_v27 = vpop.f32.mrb[24].mxu0 }
 0x111   :  { %741 = vst.msk [vmem:[%s1570_s4 + $0xd0] sm:$0xff] %vm714_vm1, %v879_v27  ;;  %v555_v29 = vpop.f32.mrb[25].mxu0 }
 0x112   :  { %v911_v28 = vpop.f32.mrb[24].mxu1  ;;  %739 = vst.msk [vmem:[%s1570_s4 + $0xc0] sm:$0xff] %vm714_vm1, %v555_v29  ;;  %v880_v31 = vpop.f32.mrb[26].mxu0 }
 0x113   :  { %773 = vst.msk [vmem:[%s1570_s4 + $0x1d0] sm:$0xff] %vm714_vm1, %v911_v28  ;;  %v683_v30 = vpop.f32.mrb[25].mxu1  ;;  %742 = vst.msk [vmem:[%s1570_s4 + $0xd8] sm:$0xff] %vm714_vm1, %v880_v31  ;;  %v558_v33 = vpop.f32.mrb[27].mxu0 }
 0x114   :  { %771 = vst.msk [vmem:[%s1570_s4 + $0x1c0] sm:$0xff] %vm714_vm1, %v683_v30  ;;  %v912_v32 = vpop.f32.mrb[26].mxu1  ;;  %740 = vst.msk [vmem:[%s1570_s4 + $0xc8] sm:$0xff] %vm714_vm1, %v558_v33 }
 0x115   :  { %774 = vst.msk [vmem:[%s1570_s4 + $0x1d8] sm:$0xff] %vm714_vm1, %v912_v32  ;;  %v686_v34 = vpop.f32.mrb[27].mxu1 }
 0x116   :  { %772 = vst.msk [vmem:[%s1570_s4 + $0x1c8] sm:$0xff] %vm714_vm1, %v686_v34 }
 0x118   :  { %v883_v35 = vpop.f32.mrb[28].mxu0 }
 0x119   :  { %745 = vst.msk [vmem:[%s1570_s4 + $0xf0] sm:$0xff] %vm714_vm1, %v883_v35  ;;  %v571_v37 = vpop.f32.mrb[29].mxu0 }
 0x11a   :  { %v915_v36 = vpop.f32.mrb[28].mxu1  ;;  %743 = vst.msk [vmem:[%s1570_s4 + $0xe0] sm:$0xff] %vm714_vm1, %v571_v37  ;;  %v884_v3 = vpop.f32.mrb[30].mxu0 }
 0x11b   :  { %777 = vst.msk [vmem:[%s1570_s4 + $0x1f0] sm:$0xff] %vm714_vm1, %v915_v36  ;;  %v699_v38 = vpop.f32.mrb[29].mxu1  ;;  %746 = vst.msk [vmem:[%s1570_s4 + $0xf8] sm:$0xff] %vm714_vm1, %v884_v3  ;;  %v574_v40 = vpop.f32.mrb[31].mxu0 }
 0x11c   :  { %775 = vst.msk [vmem:[%s1570_s4 + $0x1e0] sm:$0xff] %vm714_vm1, %v699_v38  ;;  %v916_v39 = vpop.f32.mrb[30].mxu1  ;;  %744 = vst.msk [vmem:[%s1570_s4 + $0xe8] sm:$0xff] %vm714_vm1, %v574_v40 }
 0x11d   :  { %778 = vst.msk [vmem:[%s1570_s4 + $0x1f8] sm:$0xff] %vm714_vm1, %v916_v39  ;;  %v702_v41 = vpop.f32.mrb[31].mxu1 }
 0x11e   :  { %776 = vst.msk [vmem:[%s1570_s4 + $0x1e8] sm:$0xff] %vm714_vm1, %v702_v41 }

</bundles_post_ra>
